<compile_context>
chip_gen: v5e
topology: v5e:2x2
jax: 0.10.0
libtpu: 0.0.40
codegen_flags: <defaults>
</compile_context>

<pallas_src>
import jax
import jax.numpy as jnp
from jax.experimental import pallas as pl
from jax.experimental.pallas import tpu as pltpu

# ---- model hyperparameters (consistent with the module) --------------------
CONTEXT_SIZE = 2
EMBED_SIZE = 64
VOCAB_SIZE = 256
HIDDEN = 128
IN_FEATURES = CONTEXT_SIZE * EMBED_SIZE      # 128
FUSED_ROWS = CONTEXT_SIZE * VOCAB_SIZE       # 512


def _round_up(x, m):
    return (x + m - 1) // m * m


def ngram_kernel(idx_ref, fused_ref, b1_ref, w2_ref, b2_ref, o_ref):
    """combined one-hot @ fused(emb,fc1) -> relu -> fc2 -> log_softmax."""
    idx = idx_ref[...]                                          # (blk, C) int32
    blk = idx.shape[0]
    lane = jax.lax.broadcasted_iota(jnp.int32, (blk, FUSED_ROWS), 1)

    # Combined one-hot over the fused (context, vocab) axis: row r has ones at
    # lanes c*VOCAB + idx[r, c].  Offsets differ per context so hits never clash.
    hits = lane == idx[:, 0:1]
    for c in range(1, CONTEXT_SIZE):                            # static tiny loop
        hits = jnp.logical_or(hits, lane == (idx[:, c:c + 1] + c * VOCAB_SIZE))
    onehot = hits.astype(jnp.bfloat16)                          # (blk, 512)

    # Single MXU matmul does embedding gather + fc1 in one shot (f32 accumulate).
    pre = jnp.dot(onehot, fused_ref[...],
                  preferred_element_type=jnp.float32)           # (blk, H)
    h = jnp.maximum(pre + b1_ref[...], 0.0)                     # bias + ReLU in f32

    logits = jnp.dot(h.astype(jnp.bfloat16), w2_ref[...],
                     preferred_element_type=jnp.float32) + b2_ref[...]   # (blk, V)

    # numerically stable log_softmax along the vocab axis (f32)
    m = jnp.max(logits, axis=-1, keepdims=True)
    shifted = logits - m
    lse = jnp.log(jnp.sum(jnp.exp(shifted), axis=-1, keepdims=True))
    o_ref[...] = (shifted - lse).astype(o_ref.dtype)


def fuse_embedding_fc1(emb, w1):
    """fused[c*V + v, :] = emb[v, :] @ W1[c*E:(c+1)*E, :]  -> (C*V, H) bf16."""
    emb32 = emb.astype(jnp.float32)
    w132 = w1.astype(jnp.float32)
    blocks = [emb32 @ w132[c * EMBED_SIZE:(c + 1) * EMBED_SIZE, :]
              for c in range(CONTEXT_SIZE)]
    return jnp.concatenate(blocks, axis=0).astype(jnp.bfloat16)


def _choose_block_b(b, requested=None, max_block=1024, min_steps=2):
    if requested is not None:
        return max(8, _round_up(requested, 8))
    # Fewer, fatter grid steps (amortize per-step overhead), but keep >= min_steps
    # when the batch allows so v7x can shard the "parallel" batch axis across cores.
    target = pl.cdiv(b, min_steps)
    return max(8, min(max_block, _round_up(target, 8)))


def ngram_forward(context_idx, emb, w1, b1, w2, b2,
                  block_b=None, out_dtype=jnp.float32):
    """Batched forward. `context_idx`: int32 (B, CONTEXT_SIZE) -> (B, VOCAB) log-probs."""
    context_idx = jnp.asarray(context_idx, jnp.int32)
    if context_idx.ndim == 1:
        context_idx = context_idx[None, :]
    b = context_idx.shape[0]

    block_b = _choose_block_b(b, block_b)
    b_pad = _round_up(b, block_b)
    if b_pad != b:
        context_idx = jnp.pad(context_idx, ((0, b_pad - b), (0, 0)))

    fused = fuse_embedding_fc1(emb, w1)                          # (512, 128) bf16
    w2 = jnp.asarray(w2, jnp.bfloat16)
    b1 = jnp.asarray(b1, jnp.float32).reshape(1, HIDDEN)
    b2 = jnp.asarray(b2, jnp.float32).reshape(1, VOCAB_SIZE)

    out_itemsize = jnp.dtype(out_dtype).itemsize
    cost = pl.CostEstimate(
        flops=2 * b_pad * (FUSED_ROWS * HIDDEN + HIDDEN * VOCAB_SIZE),
        transcendentals=b_pad * VOCAB_SIZE,
        bytes_accessed=int(b_pad * CONTEXT_SIZE * 4
                           + b_pad * VOCAB_SIZE * out_itemsize
                           + fused.size * 2 + w2.size * 2
                           + b1.size * 4 + b2.size * 4),
    )

    const = lambda shape: pl.BlockSpec(shape, lambda i: (0, 0))  # VMEM-resident weights
    out = pl.pallas_call(
        ngram_kernel,
        out_shape=jax.ShapeDtypeStruct((b_pad, VOCAB_SIZE), out_dtype),
        grid=(b_pad // block_b,),
        in_specs=[
            pl.BlockSpec((block_b, CONTEXT_SIZE), lambda i: (i, 0)),  # indices tile
            const((FUSED_ROWS, HIDDEN)),                              # fused emb+fc1
            const((1, HIDDEN)),                                       # b1
            const((HIDDEN, VOCAB_SIZE)),                              # w2
            const((1, VOCAB_SIZE)),                                   # b2
        ],
        out_specs=pl.BlockSpec((block_b, VOCAB_SIZE), lambda i: (i, 0)),
        compiler_params=pltpu.CompilerParams(
            dimension_semantics=("parallel",)),
        cost_estimate=cost,
    )(context_idx, fused, b1, w2, b2)
    return out[:b]


def init_params(key):
    """Deterministic synthetic parameters (shapes dictated by __init__)."""
    k_emb, k_w1, k_b1, k_w2, k_b2 = jax.random.split(key, 5)
    emb = jax.random.normal(k_emb, (VOCAB_SIZE, EMBED_SIZE),
                            jnp.float32).astype(jnp.bfloat16)
    # nn.Linear(in, out) weight is (out, in); we store its transpose (in, out).
    w1 = (jax.random.normal(k_w1, (IN_FEATURES, HIDDEN), jnp.float32)
          * 0.05).astype(jnp.bfloat16)
    b1 = jax.random.normal(k_b1, (1, HIDDEN), jnp.float32) * 0.05
    w2 = (jax.random.normal(k_w2, (HIDDEN, VOCAB_SIZE), jnp.float32)
          * 0.05).astype(jnp.bfloat16)
    b2 = jax.random.normal(k_b2, (1, VOCAB_SIZE), jnp.float32) * 0.05
    return emb, w1, b1, w2, b2


def reference_forward(context_idx, emb, w1, b1, w2, b2):
    """Pure-JAX reference mirroring the kernel's fused-bf16 / f32-accum math."""
    fused = fuse_embedding_fc1(emb, w1).astype(jnp.float32)      # (C*V, H)
    offsets = jnp.arange(CONTEXT_SIZE, dtype=jnp.int32)[None, :] * VOCAB_SIZE
    rows = context_idx.astype(jnp.int32) + offsets               # (B, C)
    pre = jnp.take(fused, rows, axis=0).sum(axis=1)              # (B, H)
    h = jnp.maximum(pre + b1, 0.0)
    h = h.astype(jnp.bfloat16).astype(jnp.float32)               # kernel feeds fc2 in bf16
    logits = h @ w2.astype(jnp.float32) + b2
    return jax.nn.log_softmax(logits, axis=-1)


if __name__ == "__main__":
    key = jax.random.PRNGKey(0)
    k_params, k_idx = jax.random.split(key)
    params = init_params(k_params)

    # batch of n-gram contexts (each row = the module's `inputs`)
    B = 256
    indices = jax.random.randint(k_idx, (B, CONTEXT_SIZE), 0, VOCAB_SIZE,
                                 dtype=jnp.int32)

    log_probs = ngram_forward(indices, *params)
    log_probs = jax.block_until_ready(log_probs)

    ref = reference_forward(indices, *params)
    assert log_probs.shape == (B, VOCAB_SIZE)
    assert jnp.allclose(log_probs, ref, atol=2e-3, rtol=2e-3), "mismatch vs reference"
    # log_softmax rows must sum to 1 in prob space
    assert jnp.allclose(jnp.sum(jnp.exp(log_probs), axis=-1), 1.0, atol=1e-4)

    print("KERNEL_OK")
</pallas_src>

<mosaic_0001>
module attributes {stable_mosaic.version = 11 : i64} {
  func.func @ngram_kernel(%arg0: i32, %arg1: memref<128x2xi32, #tpu.memory_space<vmem>>, %arg2: memref<512x128xbf16, #tpu.memory_space<vmem>>, %arg3: memref<1x128xf32, #tpu.memory_space<vmem>>, %arg4: memref<128x256xbf16, #tpu.memory_space<vmem>>, %arg5: memref<1x256xf32, #tpu.memory_space<vmem>>, %arg6: memref<128x256xf32, #tpu.memory_space<vmem>>) attributes {dimension_semantics = [#tpu.dimension_semantics<parallel>], iteration_bounds = array<i64: 2>, scalar_prefetch = 0 : i64, scratch_operands = 0 : i64, tpu.core_type = #tpu.core_type<tc>, window_params = [{transform_indices = @transform_0, window_bounds = array<i64: 128, 2>}, {pipeline_mode = #tpu.pipeline_mode<synchronous>, transform_indices = @transform_1, window_bounds = array<i64: 512, 128>}, {pipeline_mode = #tpu.pipeline_mode<synchronous>, transform_indices = @transform_2, window_bounds = array<i64: 1, 128>}, {pipeline_mode = #tpu.pipeline_mode<synchronous>, transform_indices = @transform_3, window_bounds = array<i64: 128, 256>}, {pipeline_mode = #tpu.pipeline_mode<synchronous>, transform_indices = @transform_4, window_bounds = array<i64: 1, 256>}, {transform_indices = @transform_5, window_bounds = array<i64: 128, 256>}]} {
    %c0 = arith.constant 0 : index
    %c0_0 = arith.constant 0 : index
    %0 = vector.load %arg1[%c0, %c0_0] : memref<128x2xi32, #tpu.memory_space<vmem>>, vector<128x2xi32>
    %1 = tpu.iota {dimensions = array<i32: 1>} : vector<128x512xi32>
    %2 = vector.extract_strided_slice %0 {offsets = [0, 0], sizes = [128, 1], strides = [1, 1]} : vector<128x2xi32> to vector<128x1xi32>
    %3 = vector.broadcast %2 : vector<128x1xi32> to vector<128x512xi32>
    %4 = arith.cmpi eq, %1, %3 : vector<128x512xi32>
    %5 = vector.extract_strided_slice %0 {offsets = [0, 1], sizes = [128, 1], strides = [1, 1]} : vector<128x2xi32> to vector<128x1xi32>
    %c256_i32 = arith.constant 256 : i32
    %6 = vector.broadcast %c256_i32 : i32 to vector<128x1xi32>
    %7 = arith.addi %5, %6 : vector<128x1xi32>
    %8 = vector.broadcast %7 : vector<128x1xi32> to vector<128x512xi32>
    %9 = arith.cmpi eq, %1, %8 : vector<128x512xi32>
    %10 = arith.ori %4, %9 : vector<128x512xi1>
    %11 = arith.extui %10 : vector<128x512xi1> to vector<128x512xi32>
    %12 = arith.sitofp %11 : vector<128x512xi32> to vector<128x512xf32>
    %13 = arith.truncf %12 : vector<128x512xf32> to vector<128x512xbf16>
    %c0_1 = arith.constant 0 : index
    %c0_2 = arith.constant 0 : index
    %14 = vector.load %arg2[%c0_1, %c0_2] : memref<512x128xbf16, #tpu.memory_space<vmem>>, vector<512x128xbf16>
    %cst = arith.constant dense<0.000000e+00> : vector<128x128xf32>
    %15 = tpu.matmul %13, %14, %cst {dimension_numbers = #tpu.dot_dimension_numbers<[1], [0], [0], [1], [0, 0, 1, 1], [], []>} : vector<128x512xbf16>, vector<512x128xbf16>, vector<128x128xf32> -> vector<128x128xf32>
    %c0_3 = arith.constant 0 : index
    %c0_4 = arith.constant 0 : index
    %16 = vector.load %arg3[%c0_3, %c0_4] : memref<1x128xf32, #tpu.memory_space<vmem>>, vector<1x128xf32>
    %17 = vector.broadcast %16 : vector<1x128xf32> to vector<128x128xf32>
    %18 = arith.addf %15, %17 : vector<128x128xf32>
    %cst_5 = arith.constant 0.000000e+00 : f32
    %19 = vector.broadcast %cst_5 : f32 to vector<128x128xf32>
    %20 = arith.maximumf %18, %19 : vector<128x128xf32>
    %21 = arith.truncf %20 : vector<128x128xf32> to vector<128x128xbf16>
    %c0_6 = arith.constant 0 : index
    %c0_7 = arith.constant 0 : index
    %22 = vector.load %arg4[%c0_6, %c0_7] : memref<128x256xbf16, #tpu.memory_space<vmem>>, vector<128x256xbf16>
    %cst_8 = arith.constant dense<0.000000e+00> : vector<128x256xf32>
    %23 = tpu.matmul %21, %22, %cst_8 {dimension_numbers = #tpu.dot_dimension_numbers<[1], [0], [0], [1], [0, 0, 1, 1], [], []>} : vector<128x128xbf16>, vector<128x256xbf16>, vector<128x256xf32> -> vector<128x256xf32>
    %c0_9 = arith.constant 0 : index
    %c0_10 = arith.constant 0 : index
    %24 = vector.load %arg5[%c0_9, %c0_10] : memref<1x256xf32, #tpu.memory_space<vmem>>, vector<1x256xf32>
    %25 = vector.broadcast %24 : vector<1x256xf32> to vector<128x256xf32>
    %26 = arith.addf %23, %25 : vector<128x256xf32>
    %cst_11 = arith.constant dense<0xFF800000> : vector<128xf32>
    %27 = vector.multi_reduction <maximumf>, %26, %cst_11 [1] : vector<128x256xf32> to vector<128xf32>
    %28 = vector.shape_cast %27 : vector<128xf32> to vector<128x1xf32>
    %29 = vector.broadcast %28 : vector<128x1xf32> to vector<128x256xf32>
    %30 = arith.subf %26, %29 : vector<128x256xf32>
    %31 = math.exp %30 : vector<128x256xf32>
    %cst_12 = arith.constant dense<0.000000e+00> : vector<128xf32>
    %32 = vector.multi_reduction <add>, %31, %cst_12 [1] : vector<128x256xf32> to vector<128xf32>
    %33 = vector.shape_cast %32 : vector<128xf32> to vector<128x1xf32>
    %34 = math.log %33 : vector<128x1xf32>
    %35 = vector.broadcast %34 : vector<128x1xf32> to vector<128x256xf32>
    %36 = arith.subf %30, %35 : vector<128x256xf32>
    %c0_13 = arith.constant 0 : index
    %c0_14 = arith.constant 0 : index
    %37 = vector.load %arg6[%c0_13, %c0_14] : memref<128x256xf32, #tpu.memory_space<vmem>>, vector<128x256xf32>
    tpu.vector_store %arg6[%c0_13, %c0_14], %36 {strides = array<i32>} : memref<128x256xf32, #tpu.memory_space<vmem>>, vector<128x256xf32>,
    return
  }
  func.func @transform_0(%arg0: i32) -> (i32, i32) {
    %c0_i32 = arith.constant 0 : i32
    %c0_i32_0 = arith.constant 0 : i32
    return %arg0, %c0_i32 : i32, i32
  }
  func.func @transform_1(%arg0: i32) -> (i32, i32) {
    %c0_i32 = arith.constant 0 : i32
    %c0_i32_0 = arith.constant 0 : i32
    %c0_i32_1 = arith.constant 0 : i32
    return %c0_i32, %c0_i32_0 : i32, i32
  }
  func.func @transform_2(%arg0: i32) -> (i32, i32) {
    %c0_i32 = arith.constant 0 : i32
    %c0_i32_0 = arith.constant 0 : i32
    %c0_i32_1 = arith.constant 0 : i32
    return %c0_i32, %c0_i32_0 : i32, i32
  }
  func.func @transform_3(%arg0: i32) -> (i32, i32) {
    %c0_i32 = arith.constant 0 : i32
    %c0_i32_0 = arith.constant 0 : i32
    %c0_i32_1 = arith.constant 0 : i32
    return %c0_i32, %c0_i32_0 : i32, i32
  }
  func.func @transform_4(%arg0: i32) -> (i32, i32) {
    %c0_i32 = arith.constant 0 : i32
    %c0_i32_0 = arith.constant 0 : i32
    %c0_i32_1 = arith.constant 0 : i32
    return %c0_i32, %c0_i32_0 : i32, i32
  }
  func.func @transform_5(%arg0: i32) -> (i32, i32) {
    %c0_i32 = arith.constant 0 : i32
    %c0_i32_0 = arith.constant 0 : i32
    return %arg0, %c0_i32 : i32, i32
  }
}

</mosaic_0001>

<bundles_post_ra>
// kernel: tpu_custom_call.1
= control target key start
LH: loop header
LB: loop body
LE: loop exit
PB: predicated region body
PF: predicated region fallthrough
CT: control target
= control target key end

     0   :  { %10 = vsyncpa [#allocation3], 0  ;;  %s3618_s0 = inlined_call_operand.vmem [shape: s32[256,2], index: 0, kind: input, shape index: {}]   ;;  %s3619_s1 = inlined_call_operand.vmem [shape: bf16[512,128], index: 1, kind: input, shape index: {}]   ;;  %s3620_s2 = inlined_call_operand.vmem [shape: f32[1,128], index: 2, kind: input, shape index: {}]   ;;  %s3621_s3 = inlined_call_operand.hbm [shape: bf16[128,256], index: 3, kind: input, shape index: {}]   ;;  %s3622_s4 = inlined_call_operand.vmem [shape: f32[1,256], index: 4, kind: input, shape index: {}]   ;;  %s3623_s5 = inlined_call_operand.hbm [shape: f32[256,256], index: 5, kind: output, shape index: {}]  }
   0x1   :  { %11 = vsyncpa [#allocation4], 0 }
   0x2   :  { %13 = vsyncpa [#allocation4 + $0x1], 0  ;;  %s2496_s18 = smov 0   ;;  %s2498_s19 = smov 0  }
   0x3   :  { %s2500_s20 = smov 0   ;;  %s2502_s21 = smov 0  }
   0x4 LB: > { %s2517_s22 = sadd.s32 4294967295, %s2456_s21   ;;  %s1787_s23 = sadd.s32 4294967294, %s2456_s21   ;;  %s2456_s21 = sphi %s2502_s21, %s3745_s21   ;;  %s2452_s20 = sphi %s2500_s20, %s3744_s20   ;;  %s2448_s19 = sphi %s2498_s19, %s3743_s19   ;;  %s2444_s18 = sphi %s2496_s18, %s3742_s18  }
   0x5   : > { %s2521_s24 = sadd.s32 1, %s2456_s21   ;;  %s136_s25 = sadd.s32 1, %s2452_s20 }
   0x6   : > { %s133_s26 = ssub.s32 %s2456_s21, %s2521_s24  ;;  %p146_p0 = scmp.ne.s32.totalorder %s2452_s20, %s2448_s19 }
   0x7   : > { %p134_p1 = scmp.eq.s32.totalorder %s133_s26, 0  ;;  %p147_p2 = scmp.eq.s32.totalorder %s2517_s22, 1 }
   0x8   : > { %p152_p3 = scmp.ne.s32.totalorder %s2448_s19, %s2444_s18  ;;  %p153_p4 = scmp.eq.s32.totalorder %s1787_s23, 1 }
   0x9   : > { %s2532_s27 = scalar_select %p134_p1, %s2452_s20, %s136_s25  }
   0xa   : > { %p2534_p5 = por %p147_p2, %p146_p0  ;;  %p2538_p6 = por %p153_p4, %p152_p3 }
   0xb   : > { %p1788_p7 = scmp.ge.s32.totalorder %s2456_s21, 1  ;;  %p160_p8 = scmp.lt.s32.totalorder %s2456_s21, 3 }
   0xc   : > { %p2202_p9 = scmp.eq.s32.totalorder %s2517_s22, 0  ;;  %s177_s7 = sshll.u32 %s3621_s3, 4  ;;  %s178_s7 = int_to_ptr.hbm [resolvable:$true] %s177_s7 }
   0xd   : > { %p161_p10 = pnand %p1788_p7, %p160_p8  ;;  %s2458_s8 = smov [#allocation2]  }
   0xe   : > { %s179_s9 = sshll.u32 %s2458_s8, 4  ;;  %s2459_s10 = smov 128   ;;  %s180_s9 = int_to_ptr.vmem [resolvable:$true] %s179_s9 }
   0xf   : > { %p2194_p11 = pneg %p161_p10  ;;  %s2460_s11 = smov 8  }
  0x10   : > { %207 = sbr.rel (%p161_p10) target bundleno = 882 (0x372), region = 40 }
  0x11   : > { %p2195_p12 = pnand %p2202_p9, %p2194_p11 }
  0x13   : > { %2197 = dma.hbm_to_vmem [thread:$0]  (!%p2195_p12), %s178_s7, 2048, %s180_s9, [#allocation3], %s2459_s10, %s2459_s10, %s2460_s11  }
  0x15   : > { %2435 = dma.done.wait (%p2202_p9), [#allocation3], 2048  }
  0x16   : > { %2437 = vsyncadd (%p2202_p9), [#allocation3], 4294965248  ;;  %s1794_s12 = sshll.u32 %s2517_s22, 4  ;;  %v2461_v0 = vmov 0   ;;  %v2462_v1 = vmov 1   ;;  %v2129_v29 = vld [vmem:[%s3619_s1 + $0x38] sm:$0xff]  ;;  %v259_v56 = vlaneseq }
  0x17   : > { %2245 = vset.pattern.permute.xlu0 %v2461_v0  ;;  %p237_p13 = scmp.lt.s32.totalorder %s1794_s12, 31  ;;  %2246 = vset.pattern.permute.xlu1 %v2462_v1  ;;  %v2137_v30 = vld [vmem:[%s3619_s1 + $0x78] sm:$0xff]  ;;  %v2128_v31 = vld [vmem:[%s3619_s1 + $0x30] sm:$0xff]  ;;  %v2127_v35 = vld [vmem:[%s3619_s1 + $0x28] sm:$0xff]  ;;  %s233_s6 = sand.u32 1, %s2448_s19  }
  0x18   : > { %2247 = vset.pattern.permute.xlu2 %v2461_v0  ;;  %2172 = vmatpush.bf16.msra.mxu2 %v2129_v29  ;;  %v2136_v34 = vld [vmem:[%s3619_s1 + $0x70] sm:$0xff]  ;;  %v2135_v36 = vld [vmem:[%s3619_s1 + $0x68] sm:$0xff]  ;;  %v2126_v38 = vld [vmem:[%s3619_s1 + $0x20] sm:$0xff]  ;;  %v2660_v58 = vand.u32 127, %v259_v56  ;;  %v3693_v56 = vmov 0  ;;  %s1793_s7 = sshll.u32 %s233_s6, 8 }
  0x19   : > { %s3747_s12 = smov (!%p237_p13, %s1794_s12), 31  ;;  %2180 = vmatpush.bf16.msra.mxu3 %v2137_v30  ;;  %988 = vmatpush.bf16.msra.mxu0 %v2129_v29  ;;  %v2134_v39 = vld [vmem:[%s3619_s1 + $0x60] sm:$0xff]  ;;  %v2125_v40 = vld [vmem:[%s3619_s1 + $0x18] sm:$0xff]  ;;  %v2124_v42 = vld [vmem:[%s3619_s1 + $0x10] sm:$0xff]  ;;  %v3667_v29 = vmov 0  ;;  %s3520_s8 = scalar_lea.vmem [#allocation5], %s1793_s7 }
  0x1a   : > { %s1795_s13 = sshll.u32 %s3747_s12, 3  ;;  %1037 = vmatpush.bf16.msra.mxu1 %v2137_v30  ;;  %v2133_v41 = vld [vmem:[%s3619_s1 + $0x58] sm:$0xff]  ;;  %v2132_v43 = vld [vmem:[%s3619_s1 + $0x50] sm:$0xff]  ;;  %v2123_v45 = vld [vmem:[%s3619_s1 + $0x8] sm:$0xff]  ;;  %v2669_v62 = vadd.s32 256, %v2660_v58  ;;  %v2672_v63 = vadd.s32 384, %v2660_v58 }
  0x1b   : > { %s2561_s16 = scalar_lea.vmem %s3618_s0, %s1795_s13  ;;  %v2131_v46 = vld [vmem:[%s3619_s1 + $0x48] sm:$0xff]  ;;  %v2122_v48 = vld [vmem:[%s3619_s1] sm:$0xff]  ;;  %v2145_v52 = vld [vmem:[%s3619_s1 + $0xb8] sm:$0xff]  ;;  %s2171_s9 = sshll.u32 %s2517_s22, 8 }
  0x1c   : > { %v251_v2 = vld [vmem:[%s2561_s16 + $0x40] sm:$0xff]  ;;  %v253_v3 = vld [vmem:[%s2561_s16 + $0x50] sm:$0xff]  ;;  %v252_v5 = vld [vmem:[%s2561_s16 + $0x48] sm:$0xff]  ;;  %2173 = vmatpush.bf16.msra.mxu2 %v2128_v31  ;;  %s1709_s12 = scalar_lea.hbm %s3623_s5, %s2171_s9  ;;  %s1710_s13 = sshll.u32 %s3520_s8, 4  ;;  %s1711_s13 = int_to_ptr.vmem [resolvable:$true] %s1710_s13 }
  0x1d   : > { %289 = vperm.xlu0 %2245, %v251_v2   ;;  %v384_v4 = vadd.s32 256, %v251_v2  ;;  %295 = vperm.xlu2 %2247, %v253_v3   ;;  %v385_v6 = vadd.s32 256, %v252_v5  ;;  %v254_v7 = vld [vmem:[%s2561_s16 + $0x58] sm:$0xff]  ;;  %v386_v8 = vadd.s32 256, %v253_v3  ;;  %v255_v9 = vld [vmem:[%s2561_s16 + $0x60] sm:$0xff]  ;;  %v256_v11 = vld [vmem:[%s2561_s16 + $0x68] sm:$0xff] }
  0x1e   : > { %v387_v10 = vadd.s32 256, %v254_v7  ;;  %v389_v12 = vadd.s32 256, %v256_v11  ;;  %v388_v13 = vadd.s32 256, %v255_v9  ;;  %v257_v14 = vld [vmem:[%s2561_s16 + $0x70] sm:$0xff]  ;;  %v258_v16 = vld [vmem:[%s2561_s16 + $0x78] sm:$0xff]  ;;  %v244_v17 = vld [vmem:[%s2561_s16 + $0x8] sm:$0xff]  ;;  %2181 = vmatpush.bf16.msra.mxu3 %v2136_v34  ;;  %989 = vmatpush.bf16.msra.mxu0 %v2128_v31 }
  0x1f   : > { %417 = vperm.xlu1 %2246, %v384_v4   ;;  %v390_v15 = vadd.s32 256, %v257_v14  ;;  %v391_v18 = vadd.s32 256, %v258_v16  ;;  %v243_v19 = vld [vmem:[%s2561_s16] sm:$0xff]  ;;  %v245_v20 = vld [vmem:[%s2561_s16 + $0x10] sm:$0xff]  ;;  %v377_v21 = vadd.s32 256, %v244_v17  ;;  %v248_v24 = vld [vmem:[%s2561_s16 + $0x28] sm:$0xff]  ;;  %1038 = vmatpush.bf16.msra.mxu1 %v2136_v34 }
  0x20   : > { %v378_v22 = vadd.s32 256, %v245_v20  ;;  %v376_v23 = vadd.s32 256, %v243_v19  ;;  %v381_v25 = vadd.s32 256, %v248_v24  ;;  %v246_v26 = vld [vmem:[%s2561_s16 + $0x18] sm:$0xff]  ;;  %v249_v27 = vld [vmem:[%s2561_s16 + $0x30] sm:$0xff]  ;;  %v247_v32 = vld [vmem:[%s2561_s16 + $0x20] sm:$0xff]  ;;  %2174 = vmatpush.bf16.msra.mxu2 %v2127_v35 }
  0x21   : > { %v382_v28 = vadd.s32 256, %v249_v27  ;;  %v379_v33 = vadd.s32 256, %v246_v26  ;;  %v380_v37 = vadd.s32 256, %v247_v32  ;;  %v250_v44 = vld [vmem:[%s2561_s16 + $0x38] sm:$0xff]  ;;  %v2130_v49 = vld [vmem:[%s3619_s1 + $0x40] sm:$0xff]  ;;  %v2144_v54 = vld [vmem:[%s3619_s1 + $0xb0] sm:$0xff] }
  0x22   : > { %2182 = vmatpush.bf16.msra.mxu3 %v2135_v36  ;;  %990 = vmatpush.bf16.msra.mxu0 %v2127_v35  ;;  %v383_v50 = vadd.s32 256, %v250_v44  ;;  %v2153_v53 = vld [vmem:[%s3619_s1 + $0xf8] sm:$0xff]  ;;  %v2152_v55 = vld [vmem:[%s3619_s1 + $0xf0] sm:$0xff]  ;;  %v2143_v60 = vld [vmem:[%s3619_s1 + $0xa8] sm:$0xff]  ;;  %v2685_v4 = vadd.s32 128, %v2660_v58  ;;  %v3671_v35 = vmov 0 }
  0x23   : > { %1039 = vmatpush.bf16.msra.mxu1 %v2135_v36  ;;  %v2151_v61 = vld [vmem:[%s3619_s1 + $0xe8] sm:$0xff]  ;;  %v2142_v2 = vld [vmem:[%s3619_s1 + $0xa0] sm:$0xff]  ;;  %s1712_s16 = sshll.u32 %s1709_s12, 4  ;;  %s1697_s22 = scalar_lea.sflag [#allocation4], %s233_s6  ;;  %s1713_s16 = int_to_ptr.hbm [resolvable:$true] %s1712_s16 }
  0x24   : > { %2175 = vmatpush.bf16.msra.mxu2 %v2126_v38  ;;  %v2150_v3 = vld [vmem:[%s3619_s1 + $0xe0] sm:$0xff]  ;;  %v2139_v30 = vld [vmem:[%s3619_s1 + $0x88] sm:$0xff]  ;;  %s2404_s14 = sshra.s32 %s1713_s16, 4  ;;  %s2410_s25 = scalar_lea.hbm %s3623_s5, 512  ;;  %s2405_s14 = int_to_ptr.hbm [resolvable:$true] %s2404_s14 }
  0x25   : > { %292 = vperm.xlu0 %2245, %v252_v5   ;;  %298 = vperm.xlu2 %2247, %v254_v7   ;;  %v2147_v31 = vld [vmem:[%s3619_s1 + $0xc8] sm:$0xff]  ;;  %v2138_v34 = vld [vmem:[%s3619_s1 + $0x80] sm:$0xff]  ;;  %s2406_s15 = scalar_lea.hbm %s2405_s14, 256  ;;  %p2411_p3 = scmp.lt.s32.totalorder %s2405_s14, %s3623_s5 }
  0x26   : > { %2183 = vmatpush.bf16.msra.mxu3 %v2134_v39  ;;  %991 = vmatpush.bf16.msra.mxu0 %v2126_v38  ;;  %v3673_v38 = vmov 0  ;;  %v2070_v5 = vld [vmem:[#allocation2 + $0x20] sm:$0xf]  ;;  %p2407_p0 = scmp.ne.s32.totalorder %s2405_s14, %s2406_s15  ;;  %p2412_p4 = scmp.lt.s32.totalorder %s2410_s25, %s2406_s15 }
  0x27   : > { %420 = vperm.xlu1 %2246, %v385_v6   ;;  %1040 = vmatpush.bf16.msra.mxu1 %v2134_v39  ;;  %v3644_v6 = vmov 0 }
  0x28   : > { %2176 = vmatpush.bf16.msra.mxu2 %v2125_v40  ;;  %p2408_p1 = pnand %p2407_p0, %p2534_p5  ;;  %p2413_p7 = por %p2412_p4, %p2411_p3 }
  0x2a   : > { %2184 = vmatpush.bf16.msra.mxu3 %v2133_v41  ;;  %992 = vmatpush.bf16.msra.mxu0 %v2125_v40  ;;  %v2096_v40 = vld [vmem:[#allocation2 + $0x58] sm:$0xf0]  ;;  %p2409_p2 = pneg %p2408_p1 }
  0x2b   : > { %1041 = vmatpush.bf16.msra.mxu1 %v2133_v41  ;;  %v2146_v41 = vld [vmem:[%s3619_s1 + $0xc0] sm:$0xff] }
  0x2c   : > { %2177 = vmatpush.bf16.msra.mxu2 %v2124_v42  ;;  %p2414_p8 = pnand %p2413_p7, %p2409_p2 }
  0x2d   : > { %2248 = vset.pattern.permute.xlu0 %v2462_v1  ;;  %301 = vperm.xlu2 %2247, %v255_v9   ;;  %v3648_v9 = vmov 0 }
  0x2e   : > { %423 = vperm.xlu0 %2248, %v386_v8   ;;  %2185 = vmatpush.bf16.msra.mxu3 %v2132_v43  ;;  %v3646_v8 = vmov 0 }
  0x2f   : > { %426 = vperm.xlu1 %2246, %v387_v10   ;;  %993 = vmatpush.bf16.msra.mxu0 %v2124_v42  ;;  %v3680_v42 = vmov 0 }
  0x30   : > { %1042 = vmatpush.bf16.msra.mxu1 %v2132_v43  ;;  %2178 = vmatpush.bf16.msra.mxu2 %v2123_v45  ;;  %v3683_v43 = vmov 0 }
  0x32   : > { %2186 = vmatpush.bf16.msra.mxu3 %v2131_v46 }
  0x33   : > { %994 = vmatpush.bf16.msra.mxu0 %v2123_v45  ;;  %v3685_v45 = vmov 0 }
  0x34   : > { %1043 = vmatpush.bf16.msra.mxu1 %v2131_v46  ;;  %2179 = vmatpush.bf16.msra.mxu2 %v2122_v48 }
  0x35   : > { %2250 = vset.pattern.permute.xlu2 %v2462_v1 }
  0x36   : > { %432 = vperm.xlu0 %2248, %v389_v12   ;;  %429 = vperm.xlu2 %2250, %v388_v13   ;;  %v2463_v12 = vmov 1.0|1.0   ;;  %v2141_v13 = vld [vmem:[%s3619_s1 + $0x98] sm:$0xff] }
  0x37   : > { %2249 = vset.pattern.permute.xlu1 %v2461_v0  ;;  %2187 = vmatpush.bf16.msra.mxu3 %v2130_v49 }
  0x38   : > { %304 = vperm.xlu1 %2249, %v256_v11   ;;  %995 = vmatpush.bf16.msra.mxu0 %v2122_v48  ;;  %v3650_v11 = vmov 0  ;;  %v2163_v48 = vld [vmem:[#allocation2 + $0x44] sm:$0xf0] }
  0x39   : > { %1044 = vmatpush.bf16.msra.mxu1 %v2130_v49  ;;  %1086 = vmatpush.bf16.msrb.mxu2 %v2145_v52 }
  0x3b   : > { %1135 = vmatpush.bf16.msrb.mxu3 %v2153_v53 }
  0x3d   : > { %1087 = vmatpush.bf16.msrb.mxu2 %v2144_v54  ;;  %v3691_v54 = vmov 0 }
  0x3e   : > { %435 = vperm.xlu0 %2248, %v390_v15   ;;  %2251 = vset.pattern.permute.xlu2 %v2461_v0  ;;  %v3652_v15 = vmov 0 }
  0x3f   : > { %310 = vperm.xlu2 %2251, %v258_v16   ;;  %1136 = vmatpush.bf16.msrb.mxu3 %v2152_v55 }
  0x40   : > { %307 = vperm.xlu1 %2249, %v257_v14   ;;  %v2149_v14 = vld [vmem:[%s3619_s1 + $0xd8] sm:$0xff] }
  0x41   : > { %1088 = vmatpush.bf16.msrb.mxu2 %v2143_v60  ;;  %v3697_v60 = vmov 0 }
  0x43   : > { %1137 = vmatpush.bf16.msrb.mxu3 %v2151_v61 }
  0x45   : > { %1089 = vmatpush.bf16.msrb.mxu2 %v2142_v2 }
  0x46   : > { %2253 = vset.pattern.permute.xlu0 %v2461_v0 }
  0x47   : > { %268 = vperm.xlu0 %2253, %v244_v17   ;;  %265 = vperm.xlu2 %2251, %v243_v19   ;;  %v2140_v19 = vld [vmem:[%s3619_s1 + $0x90] sm:$0xff] }
  0x48   : > { %2252 = vset.pattern.permute.xlu1 %v2462_v1  ;;  %1138 = vmatpush.bf16.msrb.mxu3 %v2150_v3 }
  0x49   : > { %438 = vperm.xlu1 %2252, %v391_v18   ;;  %1090 = vmatpush.bf16.msrb.mxu2 %v2141_v13  ;;  %v3655_v18 = vmov 0 }
  0x4c   : > { %1139 = vmatpush.bf16.msrb.mxu3 %v2149_v14 }
  0x4d   : > { %1091 = vmatpush.bf16.msrb.mxu2 %v2140_v19  ;;  %v3713_v19 = vmov 0 }
  0x4f   : > { %2257 = vset.pattern.permute.xlu0 %v2462_v1  ;;  %2254 = vset.pattern.permute.xlu2 %v2462_v1 }
  0x50   : > { %399 = vperm.xlu0 %2257, %v378_v22   ;;  %396 = vperm.xlu2 %2254, %v377_v21   ;;  %v2112_v21 = vld [vmem:[#allocation2 + $0x78] sm:$0xf0] }
  0x51   : > { %393 = vperm.xlu1 %2252, %v376_v23   ;;  %1092 = vmatpush.bf16.msrb.mxu2 %v2139_v30 }
  0x55   : > { %1093 = vmatpush.bf16.msrb.mxu2 %v2138_v34  ;;  %v2094_v34 = vld [vmem:[#allocation2 + $0x50] sm:$0xf] }
  0x58   : > { %408 = vperm.xlu0 %2257, %v381_v25   ;;  %2256 = vset.pattern.permute.xlu2 %v2461_v0 }
  0x59   : > { %2255 = vset.pattern.permute.xlu1 %v2461_v0  ;;  %274 = vperm.xlu2 %2256, %v246_v26   ;;  %v2148_v26 = vld [vmem:[%s3619_s1 + $0xd0] sm:$0xff] }
  0x5a   : > { %271 = vperm.xlu1 %2255, %v245_v20   ;;  %1140 = vmatpush.bf16.msrb.mxu3 %v2148_v26  ;;  %v2104_v26 = vld [vmem:[#allocation2 + $0x68] sm:$0xf0] }
  0x5e   : > { %1141 = vmatpush.bf16.msrb.mxu3 %v2147_v31 }
  0x60   : > { %411 = vperm.xlu0 %2257, %v382_v28  }
  0x61   : > { %277 = vperm.xlu2 %2256, %v247_v32  }
  0x62   : > { %2258 = vset.pattern.permute.xlu1 %v2462_v1  ;;  %1142 = vmatpush.bf16.msrb.mxu3 %v2146_v41 }
  0x63   : > { %402 = vperm.xlu1 %2258, %v379_v33   ;;  %v3669_v33 = vmov 0 }
  0x69   : > { %2260 = vset.pattern.permute.xlu2 %v2462_v1 }
  0x6a   : > { %405 = vperm.xlu2 %2260, %v380_v37  }
  0x6b   : > { %2259 = vset.pattern.permute.xlu1 %v2461_v0 }
  0x6c   : > { %280 = vperm.xlu1 %2259, %v248_v24   ;;  %v2167_v24 = vld [vmem:[#allocation2 + $0x64] sm:$0xf0] }
  0x72   : > { %2261 = vset.pattern.permute.xlu2 %v2461_v0 }
  0x73   : > { %286 = vperm.xlu2 %2261, %v250_v44  }
  0x74   : > { %283 = vperm.xlu1 %2259, %v249_v27   ;;  %v3665_v27 = vmov 0 }
  0x77   : > { %v2635_v47 = vpop.permute.xlu2 %295 }
  0x7c   : > { %2262 = vset.pattern.permute.xlu1 %v2462_v1 }
  0x7d   : > { %414 = vperm.xlu1 %2262, %v383_v50   ;;  %v3689_v50 = vmov 0 }
  0x7f   : > { %v2644_v51 = vpop.permute.xlu2 %298 }
  0x87   : > { %v2658_v57 = vpop.permute.xlu2 %301 }
  0x88   : > { %vm362_vm7 = vcmp.eq.s32.totalorder %v2669_v62, %v2658_v57  ;;  %vm363_vm10 = vcmp.eq.s32.totalorder %v2672_v63, %v2658_v57 }
  0x8f   : > { %v290_v59 = vpop.permute.xlu0 %289 }
  0x90   : > { %vm344_vm0 = vcmp.eq.s32.totalorder %v2660_v58, %v290_v59  ;;  %v2676_v1 = vpop.permute.xlu2 %429  ;;  %vm346_vm2 = vcmp.eq.s32.totalorder %v2669_v62, %v290_v59  ;;  %vm347_vm4 = vcmp.eq.s32.totalorder %v2672_v63, %v290_v59  ;;  %vm345_vm12 = vcmp.eq.s32.totalorder %v2685_v4, %v290_v59 }
  0x91   : > { %v418_v0 = vpop.permute.xlu1 %417  ;;  %vm490_vm8 = vcmp.eq.s32.totalorder %v2669_v62, %v2676_v1  ;;  %vm491_vm11 = vcmp.eq.s32.totalorder %v2672_v63, %v2676_v1 }
  0x92   : > { %vm472_vm1 = vcmp.eq.s32.totalorder %v2660_v58, %v418_v0  ;;  %vm474_vm3 = vcmp.eq.s32.totalorder %v2669_v62, %v418_v0  ;;  %vm475_vm5 = vcmp.eq.s32.totalorder %v2672_v63, %v418_v0  ;;  %vm473_vm13 = vcmp.eq.s32.totalorder %v2685_v4, %v418_v0  ;;  %vm2713_vm15 = vmor %vm362_vm7, %vm490_vm8 }
  0x93   : > { %vm2691_vm6 = vmor %vm344_vm0, %vm472_vm1  ;;  %v3649_v9 = vsel %vm2713_vm15, 4294967295, %v3648_v9 }
  0x94   : > { %vm2699_vm9 = vmor %vm346_vm2, %vm474_vm3 }
  0x95   : > { %v3645_v6 = vsel %vm2699_vm9, 4294967295, %v3644_v6  ;;  %vm2709_vm14 = vmor %vm347_vm4, %vm475_vm5 }
  0x96   : > { %v3647_v8 = vsel %vm2709_vm14, 4294967295, %v3646_v8  ;;  %vm2717_vm0 = vmor %vm363_vm10, %vm491_vm11 }
  0x97   : > { %v293_v7 = vpop.permute.xlu0 %292  ;;  %v3651_v11 = vsel %vm2717_vm0, 4294967295, %v3650_v11  ;;  %vm537_vm9 = vmor %vm345_vm12, %vm473_vm13 }
  0x98   : > { %vm348_vm1 = vcmp.eq.s32.totalorder %v2660_v58, %v293_v7  ;;  %vm349_vm7 = vcmp.eq.s32.totalorder %v2685_v4, %v293_v7  ;;  %vm350_vm0 = vcmp.eq.s32.totalorder %v2669_v62, %v293_v7  ;;  %vm351_vm13 = vcmp.eq.s32.totalorder %v2672_v63, %v293_v7 }
  0x99   : > { %v421_v10 = vpop.permute.xlu1 %420  ;;  %v2778_v23 = vpop.permute.xlu2 %310 }
  0x9a   : > { %vm476_vm2 = vcmp.eq.s32.totalorder %v2660_v58, %v421_v10  ;;  %vm477_vm3 = vcmp.eq.s32.totalorder %v2685_v4, %v421_v10  ;;  %vm478_vm8 = vcmp.eq.s32.totalorder %v2669_v62, %v421_v10  ;;  %vm479_vm15 = vcmp.eq.s32.totalorder %v2672_v63, %v421_v10 }
  0x9b   : > { %vm540_vm4 = vmor %vm348_vm1, %vm476_vm2  ;;  %vm352_vm1 = vcmp.eq.s32.totalorder %v2660_v58, %v2635_v47 }
  0x9c   : > { %vm1996_vm5 = vmpackc.low %vm540_vm4, %vm2691_vm6 }
  0x9d   : > { %1997 = vmatmul.msk.bf16.vlgmr.msra.gmra.mxu2 %vm1996_vm5, %v2463_v12  ;;  %vm541_vm10 = vmor %vm349_vm7, %vm477_vm3  ;;  %vm356_vm3 = vcmp.eq.s32.totalorder %v2660_v58, %v2644_v51  ;;  %vm353_vm5 = vcmp.eq.s32.totalorder %v2685_v4, %v2635_v47 }
  0x9e   : > { %vm2012_vm11 = vmpackc.low %vm541_vm10, %vm537_vm9 }
  0x9f   : > { %2013 = vmatmul.msk.bf16.vlgmr.msra.gmra.mxu3 %vm2012_vm11, %v2463_v12  ;;  %vm2738_vm6 = vmor %vm350_vm0, %vm478_vm8 }
  0xa0   : > { %v3653_v15 = vsel %vm2738_vm6, 4294967295, %v3652_v15  ;;  %v424_v16 = vpop.permute.xlu0 %423  ;;  %vm2750_vm0 = vmor %vm351_vm13, %vm479_vm15  ;;  %vm357_vm15 = vcmp.eq.s32.totalorder %v2685_v4, %v2644_v51 }
  0xa1   : > { %v427_v17 = vpop.permute.xlu1 %426  ;;  %vm480_vm2 = vcmp.eq.s32.totalorder %v2660_v58, %v424_v16  ;;  %v3656_v18 = vsel %vm2750_vm0, 4294967295, %v3655_v18  ;;  %vm481_vm7 = vcmp.eq.s32.totalorder %v2685_v4, %v424_v16  ;;  %v2831_v32 = vpop.permute.xlu2 %265 }
  0xa2   : > { %vm484_vm4 = vcmp.eq.s32.totalorder %v2660_v58, %v427_v17  ;;  %vm2763_vm8 = vmor %vm352_vm1, %vm480_vm2  ;;  %vm485_vm10 = vcmp.eq.s32.totalorder %v2685_v4, %v427_v17  ;;  %vm354_vm1 = vcmp.eq.s32.totalorder %v2669_v62, %v2635_v47  ;;  %vm482_vm2 = vcmp.eq.s32.totalorder %v2669_v62, %v424_v16 }
  0xa3   : > { %vm2770_vm11 = vmor %vm356_vm3, %vm484_vm4  ;;  %vm358_vm3 = vcmp.eq.s32.totalorder %v2669_v62, %v2644_v51  ;;  %vm486_vm4 = vcmp.eq.s32.totalorder %v2669_v62, %v427_v17 }
  0xa4   : > { %vm2774_vm13 = vmor %vm353_vm5, %vm481_vm7 }
  0xa5   : > { %vm2783_vm12 = vmor %vm357_vm15, %vm485_vm10  ;;  %vm487_vm10 = vcmp.eq.s32.totalorder %v2672_v63, %v427_v17  ;;  %v3711_v17 = vmov 0 }
  0xa6   : > { %vm2797_vm7 = vmor %vm354_vm1, %vm482_vm2  ;;  %vm355_vm1 = vcmp.eq.s32.totalorder %v2672_v63, %v2635_v47  ;;  %vm483_vm2 = vcmp.eq.s32.totalorder %v2672_v63, %v424_v16  ;;  %v3709_v16 = vmov 0 }
  0xa7   : > { %v3666_v27 = vsel %vm2797_vm7, 4294967295, %v3665_v27  ;;  %vm2801_vm15 = vmor %vm358_vm3, %vm486_vm4  ;;  %vm359_vm4 = vcmp.eq.s32.totalorder %v2672_v63, %v2644_v51 }
  0xa8   : > { %v433_v25 = vpop.permute.xlu0 %432  ;;  %v3668_v29 = vsel %vm2801_vm15, 4294967295, %v3667_v29  ;;  %vm1998_vm5 = vmpackc.low %vm2770_vm11, %vm2763_vm8 }
  0xa9   : > { %vm2014_vm3 = vmpackc.low %vm2783_vm12, %vm2774_vm13  ;;  %vm494_vm11 = vcmp.eq.s32.totalorder %v2669_v62, %v433_v25  ;;  %vm360_vm13 = vcmp.eq.s32.totalorder %v2660_v58, %v2658_v57  ;;  %vm495_vm14 = vcmp.eq.s32.totalorder %v2672_v63, %v433_v25  ;;  %vm493_vm7 = vcmp.eq.s32.totalorder %v2685_v4, %v433_v25 }
  0xaa   : > { %v305_v28 = vpop.permute.xlu1 %304  ;;  %vm2833_vm8 = vmor %vm355_vm1, %vm483_vm2  ;;  %v2907_v44 = vpop.permute.xlu2 %396 }
  0xab   : > { %v3670_v33 = vsel %vm2833_vm8, 4294967295, %v3669_v33  ;;  %vm366_vm12 = vcmp.eq.s32.totalorder %v2669_v62, %v305_v28  ;;  %vm2846_vm1 = vmor %vm359_vm4, %vm487_vm10  ;;  %vm364_vm2 = vcmp.eq.s32.totalorder %v2660_v58, %v305_v28  ;;  %vm367_vm4 = vcmp.eq.s32.totalorder %v2672_v63, %v305_v28 }
  0xac   : > { %v3672_v35 = vsel %vm2846_vm1, 4294967295, %v3671_v35  ;;  %vm2860_vm15 = vmor %vm366_vm12, %vm494_vm11  ;;  %vm489_vm1 = vcmp.eq.s32.totalorder %v2685_v4, %v2676_v1 }
  0xad   : > { %1999 = vmatmul.msk.bf16.gmra.mxu2 %vm1998_vm5, %v2463_v12  ;;  %vm488_vm5 = vcmp.eq.s32.totalorder %v2660_v58, %v2676_v1  ;;  %v3674_v38 = vsel %vm2860_vm15, 4294967295, %v3673_v38 }
  0xae   : > { %vm2864_vm10 = vmor %vm360_vm13, %vm488_vm5 }
  0xaf   : > { %2015 = vmatmul.msk.bf16.gmra.mxu3 %vm2014_vm3, %v2463_v12  ;;  %vm492_vm3 = vcmp.eq.s32.totalorder %v2660_v58, %v433_v25  ;;  %vm2883_vm5 = vmor %vm367_vm4, %vm495_vm14  ;;  %vm361_vm4 = vcmp.eq.s32.totalorder %v2685_v4, %v2658_v57  ;;  %v3695_v57 = vmov 0  ;;  %v2166_v25 = vld [vmem:[#allocation2 + $0x64] sm:$0xf] }
  0xb0   : > { %v2858_v37 = vpop.permute.xlu0 %435  ;;  %vm2870_vm0 = vmor %vm364_vm2, %vm492_vm3  ;;  %v3681_v42 = vsel %vm2883_vm5, 4294967295, %v3680_v42  ;;  %vm365_vm3 = vcmp.eq.s32.totalorder %v2685_v4, %v305_v28  ;;  %v3168_v28 = vld [vmem:[%s3620_s2] ss:$0 sm:$0xff]  ;;  %v2107_v30 = vor.u32 %v2166_v25, %v2104_v26  ;;  %v2155_v26 = vld [vmem:[#allocation2 + $0x4] sm:$0xf0] }
  0xb1   : > { %vm498_vm12 = vcmp.eq.s32.totalorder %v2669_v62, %v2858_v37  ;;  %vm499_vm14 = vcmp.eq.s32.totalorder %v2672_v63, %v2858_v37  ;;  %vm553_vm11 = vmor %vm361_vm4, %vm489_vm1 }
  0xb2   : > { %v2850_v36 = vpop.permute.xlu1 %307 }
  0xb3   : > { %vm370_vm13 = vcmp.eq.s32.totalorder %v2669_v62, %v2850_v36  ;;  %vm371_vm2 = vcmp.eq.s32.totalorder %v2672_v63, %v2850_v36  ;;  %vm368_vm6 = vcmp.eq.s32.totalorder %v2660_v58, %v2850_v36  ;;  %v2966_v51 = vpop.permute.xlu2 %274 }
  0xb4   : > { %vm2897_vm15 = vmor %vm370_vm13, %vm498_vm12 }
  0xb5   : > { %v3684_v43 = vsel %vm2897_vm15, 4294967295, %v3683_v43  ;;  %vm2909_vm9 = vmor %vm371_vm2, %vm499_vm14  ;;  %vm444_vm2 = vcmp.eq.s32.totalorder %v2660_v58, %v2907_v44 }
  0xb6   : > { %v3686_v45 = vsel %vm2909_vm9, 4294967295, %v3685_v45  ;;  %vm557_vm12 = vmor %vm365_vm3, %vm493_vm7  ;;  %vm445_vm7 = vcmp.eq.s32.totalorder %v2685_v4, %v2907_v44  ;;  %vm374_vm3 = vcmp.eq.s32.totalorder %v2669_v62, %v2778_v23 }
  0xb7   : > { %vm2000_vm13 = vmpackc.low %vm2870_vm0, %vm2864_vm10  ;;  %vm312_vm10 = vcmp.eq.s32.totalorder %v2660_v58, %v2831_v32 }
  0xb8   : > { %vm2016_vm8 = vmpackc.low %vm557_vm12, %vm553_vm11  ;;  %vm313_vm12 = vcmp.eq.s32.totalorder %v2685_v4, %v2831_v32 }
  0xb9   : > { %v269_v47 = vpop.permute.xlu0 %268 }
  0xba   : > { %vm316_vm5 = vcmp.eq.s32.totalorder %v2660_v58, %v269_v47  ;;  %vm317_vm14 = vcmp.eq.s32.totalorder %v2685_v4, %v269_v47  ;;  %vm318_vm15 = vcmp.eq.s32.totalorder %v2669_v62, %v269_v47 }
  0xbb   : > { %v2913_v46 = vpop.permute.xlu1 %438  ;;  %vm508_vm1 = vmor %vm316_vm5, %vm444_vm2  ;;  %v3003_v55 = vpop.permute.xlu2 %277 }
  0xbc   : > { %vm502_vm0 = vcmp.eq.s32.totalorder %v2669_v62, %v2913_v46  ;;  %vm2933_vm11 = vmor %vm317_vm14, %vm445_vm7  ;;  %vm372_vm7 = vcmp.eq.s32.totalorder %v2660_v58, %v2778_v23 }
  0xbd   : > { %2001 = vmatmul.msk.bf16.gmra.mxu2 %vm2000_vm13, %v2463_v12  ;;  %vm373_vm13 = vcmp.eq.s32.totalorder %v2685_v4, %v2778_v23 }
  0xbf   : > { %2017 = vmatmul.msk.bf16.gmra.mxu3 %vm2016_vm8, %v2463_v12  ;;  %vm2939_vm8 = vmor %vm374_vm3, %vm502_vm0  ;;  %vm500_vm3 = vcmp.eq.s32.totalorder %v2660_v58, %v2913_v46 }
  0xc0   : > { %v3690_v50 = vsel %vm2939_vm8, 4294967295, %v3689_v50 }
  0xc2   : > { %v2978_v53 = vpop.permute.xlu0 %399 }
  0xc3   : > { %v2937_v49 = vpop.permute.xlu1 %393 }
  0xc4   : > { %vm440_vm4 = vcmp.eq.s32.totalorder %v2660_v58, %v2937_v49  ;;  %vm441_vm5 = vcmp.eq.s32.totalorder %v2685_v4, %v2937_v49  ;;  %v406_v61 = vpop.permute.xlu2 %405 }
  0xc5   : > { %vm504_vm2 = vmor %vm312_vm10, %vm440_vm4  ;;  %vm496_vm10 = vcmp.eq.s32.totalorder %v2660_v58, %v2858_v37 }
  0xc6   : > { %vm1988_vm14 = vmpackc.low %vm508_vm1, %vm504_vm2  ;;  %vm501_vm1 = vcmp.eq.s32.totalorder %v2685_v4, %v2913_v46 }
  0xc7   : > { %1989 = vmatmul.msk.bf16.vlgmr.msra.gmra.mxu0 %vm1988_vm14, %v2463_v12  ;;  %vm505_vm0 = vmor %vm313_vm12, %vm441_vm5  ;;  %vm369_vm5 = vcmp.eq.s32.totalorder %v2685_v4, %v2850_v36  ;;  %vm497_vm14 = vcmp.eq.s32.totalorder %v2685_v4, %v2858_v37  ;;  %v2165_v36 = vld [vmem:[#allocation2 + $0x54] sm:$0xf0]  ;;  %v2164_v37 = vld [vmem:[#allocation2 + $0x54] sm:$0xf] }
  0xc8   : > { %vm2004_vm9 = vmpackc.low %vm2933_vm11, %vm505_vm0  ;;  %v2095_v39 = vor.u32 %v2165_v36, %v2094_v34  ;;  %v2099_v41 = vor.u32 %v2164_v37, %v2096_v40 }
  0xc9   : > { %2005 = vmatmul.msk.bf16.vlgmr.msra.gmra.mxu1 %vm2004_vm9, %v2463_v12  ;;  %vm564_vm4 = vmor %vm372_vm7, %vm500_vm3  ;;  %vm442_vm7 = vcmp.eq.s32.totalorder %v2669_v62, %v2937_v49 }
  0xca   : > { %vm560_vm12 = vmor %vm368_vm6, %vm496_vm10  ;;  %vm446_vm6 = vcmp.eq.s32.totalorder %v2669_v62, %v2907_v44  ;;  %vm319_vm10 = vcmp.eq.s32.totalorder %v2672_v63, %v269_v47  ;;  %v3047_v1 = vpop.permute.xlu0 %408  ;;  %v2086_v47 = vld [vmem:[#allocation2 + $0x40] sm:$0xf] }
  0xcb   : > { %vm565_vm2 = vmor %vm373_vm13, %vm501_vm1  ;;  %vm314_vm13 = vcmp.eq.s32.totalorder %v2669_v62, %v2831_v32  ;;  %vm448_vm1 = vcmp.eq.s32.totalorder %v2660_v58, %v2978_v53 }
  0xcc   : > { %vm2002_vm11 = vmpackc.low %vm564_vm4, %vm560_vm12  ;;  %v2975_v52 = vpop.permute.xlu1 %271  ;;  %vm447_vm4 = vcmp.eq.s32.totalorder %v2672_v63, %v2907_v44 }
  0xcd   : > { %2003 = vmatmul.msk.bf16.gmra.mxu2 %vm2002_vm11, %v2463_v12  ;;  %vm561_vm0 = vmor %vm369_vm5, %vm497_vm14  ;;  %vm320_vm3 = vcmp.eq.s32.totalorder %v2660_v58, %v2975_v52  ;;  %vm321_vm12 = vcmp.eq.s32.totalorder %v2685_v4, %v2975_v52  ;;  %vm449_vm5 = vcmp.eq.s32.totalorder %v2685_v4, %v2978_v53  ;;  %vm375_vm14 = vcmp.eq.s32.totalorder %v2672_v63, %v2778_v23  ;;  %v287_v10 = vpop.permute.xlu2 %286  ;;  %v2102_v23 = vld [vmem:[#allocation2 + $0x60] sm:$0xf] }
  0xce   : > { %vm2018_vm9 = vmpackc.low %vm565_vm2, %vm561_vm0  ;;  %vm503_vm0 = vcmp.eq.s32.totalorder %v2672_v63, %v2913_v46 }
  0xcf   : > { %2019 = vmatmul.msk.bf16.gmra.mxu3 %vm2018_vm9, %v2463_v12  ;;  %vm2999_vm2 = vmor %vm318_vm15, %vm446_vm6  ;;  %vm324_vm15 = vcmp.eq.s32.totalorder %v2660_v58, %v2966_v51 }
  0xd0   : > { %v3692_v54 = vsel %vm2999_vm2, 4294967295, %v3691_v54  ;;  %vm3005_vm11 = vmor %vm314_vm13, %vm442_vm7  ;;  %vm325_vm2 = vcmp.eq.s32.totalorder %v2685_v4, %v2966_v51 }
  0xd1   : > { %v3694_v56 = vsel %vm3005_vm11, 4294967295, %v3693_v56  ;;  %vm512_vm9 = vmor %vm320_vm3, %vm448_vm1 }
  0xd2   : > { %vm3013_vm8 = vmor %vm319_vm10, %vm447_vm4  ;;  %vm3700_vm1 = vnez %v3694_v56  ;;  %vm3701_vm10 = vnez %v3692_v54  ;;  %v412_v14 = vpop.permute.xlu0 %411 }
  0xd3   : > { %v3696_v57 = vsel %vm3013_vm8, 4294967295, %v3695_v57  ;;  %vm513_vm6 = vmor %vm321_vm12, %vm449_vm5  ;;  %vm315_vm12 = vcmp.eq.s32.totalorder %v2672_v63, %v2831_v32  ;;  %vm443_vm5 = vcmp.eq.s32.totalorder %v2672_v63, %v2937_v49  ;;  %v2162_v49 = vld [vmem:[#allocation2 + $0x44] sm:$0xf] }
  0xd4   : > { %vm3019_vm13 = vmor %vm375_vm14, %vm503_vm0 }
  0xd5   : > { %v403_v59 = vpop.permute.xlu1 %402  ;;  %v3698_v60 = vsel %vm3019_vm13, 4294967295, %v3697_v60  ;;  %vm507_vm11 = vmor %vm315_vm12, %vm443_vm5  ;;  %vm322_vm5 = vcmp.eq.s32.totalorder %v2669_v62, %v2975_v52 }
  0xd6   : > { %vm452_vm7 = vcmp.eq.s32.totalorder %v2660_v58, %v403_v59  ;;  %vm453_vm3 = vcmp.eq.s32.totalorder %v2685_v4, %v403_v59  ;;  %vm2020_vm13 = vmpackc.low %vm3701_vm10, %vm3700_vm1  ;;  %vm461_vm10 = vcmp.eq.s32.totalorder %v2685_v4, %v3047_v1 }
  0xd7   : > { %vm516_vm4 = vmor %vm324_vm15, %vm452_vm7  ;;  %vm457_vm7 = vcmp.eq.s32.totalorder %v2685_v4, %v406_v61 }
  0xd8   : > { %vm1990_vm8 = vmpackc.low %vm516_vm4, %vm512_vm9  ;;  %vm3702_vm9 = vnez %v3696_v57 }
  0xd9   : > { %1991 = vmatmul.msk.bf16.gmra.mxu0 %vm1990_vm8, %v2463_v12  ;;  %vm517_vm14 = vmor %vm325_vm2, %vm453_vm3  ;;  %vm328_vm8 = vcmp.eq.s32.totalorder %v2660_v58, %v3003_v55  ;;  %vm456_vm2 = vcmp.eq.s32.totalorder %v2660_v58, %v406_v61 }
  0xda   : > { %vm2006_vm0 = vmpackc.low %vm517_vm14, %vm513_vm6  ;;  %vm450_vm14 = vcmp.eq.s32.totalorder %v2669_v62, %v2978_v53 }
  0xdb   : > { %2007 = vmatmul.msk.bf16.gmra.mxu1 %vm2006_vm0, %v2463_v12  ;;  %vm2036_vm15 = vmpackc.low %vm3702_vm9, %vm507_vm11  ;;  %vm329_vm11 = vcmp.eq.s32.totalorder %v2685_v4, %v3003_v55 }
  0xdc   : > { %vm3059_vm3 = vmor %vm328_vm8, %vm456_vm2  ;;  %vm454_vm8 = vcmp.eq.s32.totalorder %v2669_v62, %v403_v59 }
  0xdd   : > { %2021 = vmatmul.msk.bf16.vlgmr.msrb.gmra.mxu2 %vm2020_vm13, %v2463_v12  ;;  %vm460_vm13 = vcmp.eq.s32.totalorder %v2660_v58, %v3047_v1  ;;  %vm3071_vm12 = vmor %vm329_vm11, %vm457_vm7  ;;  %vm327_vm7 = vcmp.eq.s32.totalorder %v2672_v63, %v2966_v51 }
  0xde   : > { %v3044_v0 = vpop.permute.xlu1 %280  ;;  %vm514_vm2 = vmor %vm322_vm5, %vm450_vm14 }
  0xdf   : > { %2037 = vmatmul.msk.bf16.vlgmr.msrb.gmra.mxu3 %vm2036_vm15, %v2463_v12  ;;  %vm332_vm6 = vcmp.eq.s32.totalorder %v2660_v58, %v3044_v0  ;;  %vm333_vm1 = vcmp.eq.s32.totalorder %v2685_v4, %v3044_v0  ;;  %vm326_vm15 = vcmp.eq.s32.totalorder %v2669_v62, %v2966_v51  ;;  %v2087_v51 = vor.u32 %v2163_v48, %v2086_v47 }
  0xe0   : > { %vm3067_vm4 = vmor %vm332_vm6, %vm460_vm13  ;;  %vm323_vm6 = vcmp.eq.s32.totalorder %v2672_v63, %v2975_v52  ;;  %vm451_vm13 = vcmp.eq.s32.totalorder %v2672_v63, %v2978_v53  ;;  %v2088_v52 = vld [vmem:[#allocation2 + $0x48] sm:$0xf0] }
  0xe1   : > { %vm525_vm0 = vmor %vm333_vm1, %vm461_vm10  ;;  %v2091_v53 = vor.u32 %v2162_v49, %v2088_v52 }
  0xe2   : > { %vm1992_vm9 = vmpackc.low %vm3067_vm4, %vm3059_vm3  ;;  %vm455_vm3 = vcmp.eq.s32.totalorder %v2672_v63, %v403_v59  ;;  %v2160_v59 = vld [vmem:[#allocation2 + $0x34] sm:$0xf] }
  0xe3   : > { %vm2008_vm11 = vmpackc.low %vm525_vm0, %vm3071_vm12  ;;  %vm330_vm12 = vcmp.eq.s32.totalorder %v2669_v62, %v3003_v55  ;;  %vm458_vm0 = vcmp.eq.s32.totalorder %v2669_v62, %v406_v61 }
  0xe4   : > { %vm518_vm1 = vmor %vm326_vm15, %vm454_vm8  ;;  %vm459_vm15 = vcmp.eq.s32.totalorder %v2672_v63, %v406_v61  ;;  %vm334_vm8 = vcmp.eq.s32.totalorder %v2669_v62, %v3044_v0 }
  0xe5   : > { %vm515_vm10 = vmor %vm323_vm6, %vm451_vm13  ;;  %vm340_vm6 = vcmp.eq.s32.totalorder %v2660_v58, %v287_v10 }
  0xe6   : > { %v3079_v7 = vpop.permute.xlu1 %283  ;;  %vm519_vm4 = vmor %vm327_vm7, %vm455_vm3  ;;  %vm464_vm3 = vcmp.eq.s32.totalorder %v2660_v58, %v412_v14 }
  0xe7   : > { %vm2022_vm5 = vmpackc.low %vm518_vm1, %vm514_vm2  ;;  %vm462_vm2 = vcmp.eq.s32.totalorder %v2669_v62, %v3047_v1  ;;  %vm336_vm7 = vcmp.eq.s32.totalorder %v2660_v58, %v3079_v7 }
  0xe8   : > { %vm2038_vm14 = vmpackc.low %vm519_vm4, %vm515_vm10  ;;  %vm341_vm10 = vcmp.eq.s32.totalorder %v2685_v4, %v287_v10 }
  0xe9   : > { %1993 = vmatmul.msk.bf16.gmra.mxu0 %vm1992_vm9, %v2463_v12  ;;  %vm331_vm9 = vcmp.eq.s32.totalorder %v2672_v63, %v3003_v55 }
  0xea   : > { %vm3120_vm1 = vmor %vm331_vm9, %vm459_vm15 }
  0xeb   : > { %2009 = vmatmul.msk.bf16.gmra.mxu1 %vm2008_vm11, %v2463_v12  ;;  %vm3113_vm11 = vmor %vm330_vm12, %vm458_vm0  ;;  %v3712_v17 = vsel %vm3120_vm1, 4294967295, %v3711_v17  ;;  %vm337_vm0 = vcmp.eq.s32.totalorder %v2685_v4, %v3079_v7  ;;  %vm335_vm1 = vcmp.eq.s32.totalorder %v2672_v63, %v3044_v0  ;;  %v2080_v0 = vld [vmem:[#allocation2 + $0x38] sm:$0xf0] }
  0xec   : > { %v3710_v16 = vsel %vm3113_vm11, 4294967295, %v3709_v16  ;;  %vm528_vm12 = vmor %vm336_vm7, %vm464_vm3  ;;  %vm465_vm11 = vcmp.eq.s32.totalorder %v2685_v4, %v412_v14 }
  0xed   : > { %2023 = vmatmul.msk.bf16.gmra.mxu2 %vm2022_vm5, %v2463_v12  ;;  %vm3126_vm5 = vmor %vm334_vm8, %vm462_vm2  ;;  %vm463_vm2 = vcmp.eq.s32.totalorder %v2672_v63, %v3047_v1  ;;  %v2083_v1 = vor.u32 %v2160_v59, %v2080_v0 }
  0xee   : > { %v3714_v19 = vsel %vm3126_vm5, 4294967295, %v3713_v19  ;;  %vm529_vm8 = vmor %vm337_vm0, %vm465_vm11 }
  0xef   : > { %2039 = vmatmul.msk.bf16.gmra.mxu3 %vm2038_vm14, %v2463_v12  ;;  %v415_v13 = vpop.permute.xlu1 %414  ;;  %vm3716_vm7 = vnez %v3714_v19 }
  0xf0   : > { %vm468_vm13 = vcmp.eq.s32.totalorder %v2660_v58, %v415_v13  ;;  %vm469_vm4 = vcmp.eq.s32.totalorder %v2685_v4, %v415_v13  ;;  %vm470_vm11 = vcmp.eq.s32.totalorder %v2669_v62, %v415_v13  ;;  %vm471_vm0 = vcmp.eq.s32.totalorder %v2672_v63, %v415_v13  ;;  %v2110_v58 = vld [vmem:[#allocation2 + $0x70] sm:$0xf]  ;;  %v2168_v4 = vld [vmem:[#allocation2 + $0x74] sm:$0xf] }
  0xf1   : > { %vm532_vm14 = vmor %vm340_vm6, %vm468_vm13  ;;  %vm3715_vm13 = vnez %v3710_v16  ;;  %v2115_v22 = vor.u32 %v2168_v4, %v2112_v21  ;;  %v2156_v4 = vld [vmem:[#allocation2 + $0x14] sm:$0xf]  ;;  %v2064_v21 = vld [vmem:[#allocation2 + $0x18] sm:$0xf0] }
  0xf2   : > { %vm533_vm9 = vmor %vm341_vm10, %vm469_vm4  ;;  %vm3717_vm10 = vnez %v3712_v17 }
  0xf3   : > { %vm1994_vm15 = vmpackc.low %vm532_vm14, %vm528_vm12  ;;  %vm342_vm14 = vcmp.eq.s32.totalorder %v2669_v62, %v287_v10  ;;  %vm343_vm12 = vcmp.eq.s32.totalorder %v2672_v63, %v287_v10  ;;  %1359 = vmatpush.bf16.msrb.mxu1 %v2115_v22  ;;  %v2158_v10 = vld [vmem:[#allocation2 + $0x24] sm:$0xf]  ;;  %v2067_v22 = vor.u32 %v2156_v4, %v2064_v21 }
  0xf4   : > { %vm2010_vm5 = vmpackc.low %vm533_vm9, %vm529_vm8  ;;  %vm467_vm8 = vcmp.eq.s32.totalorder %v2672_v63, %v412_v14 }
  0xf5   : > { %vm527_vm6 = vmor %vm335_vm1, %vm463_vm2  ;;  %vm466_vm1 = vcmp.eq.s32.totalorder %v2669_v62, %v412_v14  ;;  %vm339_vm2 = vcmp.eq.s32.totalorder %v2672_v63, %v3079_v7  ;;  %v2103_v63 = vor.u32 %v2167_v24, %v2102_v23  ;;  %v2072_v14 = vld [vmem:[#allocation2 + $0x28] sm:$0xf0] }
  0xf6   : > { %vm2024_vm3 = vmpackc.low %vm3716_vm7, %vm3715_vm13  ;;  %v2075_v16 = vor.u32 %v2158_v10, %v2072_v14 }
  0xf7   : > { %vm2040_vm4 = vmpackc.low %vm527_vm6, %vm3717_vm10  ;;  %vm3718_vm10 = vnez %v3653_v15  ;;  %1360 = vmatpush.bf16.msrb.mxu1 %v2107_v30  ;;  %v2154_v30 = vld [vmem:[#allocation2 + $0x4] sm:$0xf] }
  0xf8   : > { %vm534_vm9 = vmor %vm342_vm14, %vm470_vm11  ;;  %vm3721_vm11 = vnez %v3656_v18 }
  0xf9   : > { %1995 = vmatmul.msk.bf16.gmra.mxu0 %vm1994_vm15, %v2463_v12  ;;  %vm535_vm6 = vmor %vm343_vm12, %vm471_vm0  ;;  %vm3724_vm12 = vnez %v3668_v29  ;;  %vm3725_vm0 = vnez %v3666_v27  ;;  %v2078_v29 = vld [vmem:[#allocation2 + $0x30] sm:$0xf]  ;;  %v2161_v27 = vld [vmem:[#allocation2 + $0x34] sm:$0xf0] }
  0xfa   : > { %vm531_vm7 = vmor %vm339_vm2, %vm467_vm8  ;;  %vm3728_vm2 = vnez %v3670_v33  ;;  %v2079_v61 = vor.u32 %v2161_v27, %v2078_v29 }
  0xfb   : > { %2011 = vmatmul.msk.bf16.gmra.mxu1 %vm2010_vm5, %v2463_v12  ;;  %vm338_vm5 = vcmp.eq.s32.totalorder %v2669_v62, %v3079_v7  ;;  %v2169_v62 = vld [vmem:[#allocation2 + $0x74] sm:$0xf0]  ;;  %v2159_v7 = vld [vmem:[#allocation2 + $0x24] sm:$0xf0] }
  0xfc   : > { %vm530_vm15 = vmor %vm338_vm5, %vm466_vm1  ;;  %v2111_v20 = vor.u32 %v2169_v62, %v2110_v58  ;;  %vm3722_vm5 = vnez %v3647_v8  ;;  %1361 = vmatpush.bf16.msrb.mxu1 %v2099_v41  ;;  %v2071_v13 = vor.u32 %v2159_v7, %v2070_v5 }
  0xfd   : > { %2025 = vmatmul.msk.bf16.gmra.mxu2 %vm2024_vm3, %v2463_v12  ;;  %vm2026_vm13 = vmpackc.low %vm534_vm9, %vm530_vm15  ;;  %vm3727_vm15 = vnez %v3672_v35 }
  0xfe   : > { %vm2042_vm3 = vmpackc.low %vm535_vm6, %vm531_vm7  ;;  %1310 = vmatpush.bf16.msrb.mxu0 %v2111_v20  ;;  %vm3730_vm6 = vnez %v3674_v38  ;;  %v2062_v38 = vld [vmem:[#allocation2 + $0x10] sm:$0xf] }
  0xff   : > { %2041 = vmatmul.msk.bf16.gmra.mxu3 %vm2040_vm4, %v2463_v12  ;;  %vm3719_vm4 = vnez %v3645_v6  ;;  %vm3723_vm1 = vmpackc.low %vm3721_vm11, %vm3722_vm5  ;;  %vm3737_vm11 = vnez %v3684_v43 }
 0x100   : > { %vm3720_vm14 = vmpackc.low %vm3718_vm10, %vm3719_vm4  ;;  %1362 = vmatpush.bf16.msrb.mxu1 %v2091_v53  ;;  %vm3734_vm10 = vnez %v3651_v11 }
 0x101   : > { %vm3726_vm9 = vmpackc.low %vm3724_vm12, %vm3725_vm0  ;;  %vm3740_vm12 = vnez %v3686_v45 }
 0x102   : > { %1311 = vmatpush.bf16.msrb.mxu0 %v2103_v63  ;;  %vm3729_vm8 = vmpackc.low %vm3727_vm15, %vm3728_vm2  ;;  %v2054_v63 = vld [vmem:[#allocation2] sm:$0xf] }
 0x104   : > { %1363 = vmatpush.bf16.msrb.mxu1 %v2083_v1 }
 0x106   : > { %1312 = vmatpush.bf16.msrb.mxu0 %v2095_v39 }
 0x108   : > { %1364 = vmatpush.bf16.msrb.mxu1 %v2075_v16 }
 0x10a   : > { %1313 = vmatpush.bf16.msrb.mxu0 %v2087_v51 }
 0x10c   : > { %1365 = vmatpush.bf16.msrb.mxu1 %v2067_v22 }
 0x10d   : > { %2027 = vmatmul.msk.bf16.gmra.mxu2 %vm2026_vm13, %v2463_v12  ;;  %vm3731_vm13 = vnez %v3649_v9  ;;  %v2157_v9 = vld [vmem:[#allocation2 + $0x14] sm:$0xf0] }
 0x10e   : > { %1314 = vmatpush.bf16.msrb.mxu0 %v2079_v61  ;;  %vm3732_vm7 = vmpackc.low %vm3730_vm6, %vm3731_vm13  ;;  %v2063_v20 = vor.u32 %v2157_v9, %v2062_v38 }
 0x10f   : > { %2043 = vmatmul.msk.bf16.gmra.mxu3 %vm2042_vm3, %v2463_v12  ;;  %vm3733_vm3 = vnez %v3681_v42 }
 0x110   : > { %vm3735_vm4 = vmpackc.low %vm3733_vm3, %vm3734_vm10 }
 0x112   : > { %1315 = vmatpush.bf16.msrb.mxu0 %v2071_v13 }
 0x116   : > { %1316 = vmatpush.bf16.msrb.mxu0 %v2063_v20 }
 0x11d   : > { %2029 = vmatmul.msk.bf16.gmra.mxu2 %vm3720_vm14, %v2463_v12  ;;  %vm3736_vm14 = vnez %v3690_v50 }
 0x11e   : > { %vm3738_vm5 = vmpackc.low %vm3736_vm14, %vm3737_vm11 }
 0x11f   : > { %2045 = vmatmul.msk.bf16.gmra.mxu3 %vm3723_vm1, %v2463_v12  ;;  %vm3739_vm1 = vnez %v3698_v60 }
 0x120   : > { %v1017_v15 = vpop.f32.mrf.mxu2  ;;  %vm3741_vm0 = vmpackc.low %vm3739_vm1, %vm3740_vm12 }
 0x121   : > { %v1018_v6 = vadd.f32 %v3168_v28, %v1017_v15 }
 0x122   : > { %v1066_v31 = vpop.f32.mrf.mxu3 }
 0x123   : > { %v3177_v32 = vadd.f32 %v1066_v31, %v1018_v6  ;;  %v2055_v6 = vor.u32 %v2155_v26, %v2054_v63  ;;  %v2056_v31 = vld [vmem:[#allocation2 + $0x8] sm:$0xf0] }
 0x124   : > { %v2059_v50 = vor.u32 %v2154_v30, %v2056_v31 }
 0x125   : > { %1317 = vmatpush.bf16.msrb.mxu0 %v2055_v6 }
 0x126   : > { %1366 = vmatpush.bf16.msrb.mxu1 %v2059_v50 }
 0x128   : > { %v1019_v18 = vpop.f32.mrf.mxu2 }
 0x129   : > { %v1020_v8 = vadd.f32 %v3168_v28, %v1019_v18 }
 0x12a   : > { %v1068_v44 = vpop.f32.mrf.mxu3 }
 0x12b   : > { %v3180_v46 = vadd.f32 %v1068_v44, %v1020_v8 }
 0x12d   : > { %2031 = vmatmul.msk.bf16.gmra.mxu2 %vm3726_vm9, %v2463_v12 }
 0x12f   : > { %2047 = vmatmul.msk.bf16.gmra.mxu3 %vm3729_vm8, %v2463_v12 }
 0x130   : > { %v1022_v54 = vpop.f32.mrf.mxu2 }
 0x131   : > { %v1023_v55 = vadd.f32 %v3168_v28, %v1022_v54 }
 0x132   : > { %v1071_v56 = vpop.f32.mrf.mxu3 }
 0x133   : > { %v3195_v57 = vadd.f32 %v1071_v56, %v1023_v55 }
 0x138   : > { %v1024_v35 = vpop.f32.mrf.mxu2 }
 0x139   : > { %v1025_v33 = vadd.f32 %v3168_v28, %v1024_v35 }
 0x13a   : > { %v1073_v2 = vpop.f32.mrf.mxu3 }
 0x13b   : > { %v3198_v3 = vadd.f32 %v1073_v2, %v1025_v33 }
 0x13d   : > { %2033 = vmatmul.msk.bf16.gmra.mxu2 %vm3732_vm7, %v2463_v12 }
 0x13f   : > { %2049 = vmatmul.msk.bf16.gmra.mxu3 %vm3735_vm4, %v2463_v12 }
 0x140   : > { %v1027_v17 = vpop.f32.mrf.mxu2 }
 0x141   : > { %v1028_v19 = vadd.f32 %v3168_v28, %v1027_v17 }
 0x142   : > { %v1076_v58 = vpop.f32.mrf.mxu3 }
 0x143   : > { %v3213_v62 = vadd.f32 %v1076_v58, %v1028_v19 }
 0x144   : > { %v997_v25 = vpop.f32.mrf.mxu0 }
 0x145   : > { %v998_v8 = vadd.f32 %v3168_v28, %v997_v25 }
 0x146   : > { %v1046_v36 = vpop.f32.mrf.mxu1 }
 0x147   : > { %v1047_v48 = vadd.f32 %v1046_v36, %v998_v8 }
 0x148   : > { %v1029_v23 = vpop.f32.mrf.mxu2 }
 0x149   : > { %v1030_v42 = vadd.f32 %v3168_v28, %v1029_v23 }
 0x14a   : > { %v1078_v11 = vpop.f32.mrf.mxu3 }
 0x14b   : > { %v3216_v24 = vadd.f32 %v1078_v11, %v1030_v42 }
 0x14c   : > { %v999_v60 = vpop.f32.mrf.mxu0 }
 0x14d   : > { %2035 = vmatmul.msk.bf16.gmra.mxu2 %vm3738_vm5, %v2463_v12  ;;  %v1000_v49 = vadd.f32 %v3168_v28, %v999_v60 }
 0x14e   : > { %v1048_v41 = vpop.f32.mrf.mxu1 }
 0x14f   : > { %2051 = vmatmul.msk.bf16.gmra.mxu3 %vm3741_vm0, %v2463_v12  ;;  %v1049_v53 = vadd.f32 %v1048_v41, %v1000_v49 }
 0x150   : > { %v1032_v15 = vpop.f32.mrf.mxu2 }
 0x151   : > { %v1033_v34 = vadd.f32 %v3168_v28, %v1032_v15 }
 0x152   : > { %v1081_v43 = vpop.f32.mrf.mxu3 }
 0x153   : > { %v3231_v37 = vadd.f32 %v1081_v43, %v1033_v34 }
 0x156   : > { %v1002_v18 = vpop.f32.mrf.mxu0 }
 0x157   : > { %v1003_v35 = vadd.f32 %v3168_v28, %v1002_v18 }
 0x158   : > { %v1034_v39 = vpop.f32.mrf.mxu2  ;;  %v1051_v51 = vpop.f32.mrf.mxu1 }
 0x159   : > { %v1035_v45 = vadd.f32 %v3168_v28, %v1034_v39  ;;  %v1052_v10 = vadd.f32 %v1051_v51, %v1003_v35 }
 0x15a   : > { %v1083_v12 = vpop.f32.mrf.mxu3 }
 0x15b   : > { %v3234_v40 = vadd.f32 %v1083_v12, %v1035_v45 }
 0x15e   : > { %v1004_v54 = vpop.f32.mrf.mxu0 }
 0x15f   : > { %v1005_v13 = vadd.f32 %v3168_v28, %v1004_v54 }
 0x160   : > { %v1095_v44 = vpop.f32.mrf.mxu2  ;;  %v1053_v1 = vpop.f32.mrf.mxu1 }
 0x161   : > { %v1096_v52 = vadd.f32 %v1095_v44, %v1047_v48  ;;  %v1054_v16 = vadd.f32 %v1053_v1, %v1005_v13 }
 0x162   : > { %v1144_v47 = vpop.f32.mrf.mxu3 }
 0x163   : > { %v1145_v56 = vadd.f32 %v1144_v47, %v1096_v52 }
 0x165   : > { %v1184_v61 = vmax.f32 %v1145_v56, 0.0 }
 0x166   : > { %v1007_v5 = vpop.f32.mrf.mxu0 }
 0x167   : > { %v1008_v23 = vadd.f32 %v3168_v28, %v1007_v5 }
 0x168   : > { %v1097_v55 = vpop.f32.mrf.mxu2  ;;  %v1056_v17 = vpop.f32.mrf.mxu1 }
 0x169   : > { %v1098_v29 = vadd.f32 %v1097_v55, %v1049_v53  ;;  %v1057_v26 = vadd.f32 %v1056_v17, %v1008_v23 }
 0x16a   : > { %v1146_v27 = vpop.f32.mrf.mxu3 }
 0x16b   : > { %v1147_v59 = vadd.f32 %v1146_v27, %v1098_v29 }
 0x16d   : > { %v1185_v0 = vmax.f32 %v1147_v59, 0.0 }
 0x16e   : > { %v1009_v20 = vpop.f32.mrf.mxu0 }
 0x16f   : > { %v1200_v33 = vpack.c.bf16 %v1185_v0, %v1184_v61  ;;  %v1010_v30 = vadd.f32 %v3168_v28, %v1009_v20 }
 0x170   : > { %v1100_v2 = vpop.f32.mrf.mxu2  ;;  %v1058_v25 = vpop.f32.mrf.mxu1 }
 0x171   : > { %1318 = vmatmul.bf16.vlgmr.msrb.gmra.mxu0 %v1200_v33  ;;  %1367 = vmatmul.bf16.vlgmr.msrb.gmra.mxu1 %v1200_v33  ;;  %v1101_v14 = vadd.f32 %v1100_v2, %v1052_v10  ;;  %v1059_v31 = vadd.f32 %v1058_v25, %v1010_v30 }
 0x172   : > { %v1149_v7 = vpop.f32.mrf.mxu3 }
 0x173   : > { %v1150_v58 = vadd.f32 %v1149_v7, %v1101_v14 }
 0x175   : > { %v1186_v21 = vmax.f32 %v1150_v58, 0.0 }
 0x176   : > { %v1012_v6 = vpop.f32.mrf.mxu0 }
 0x177   : > { %v1013_v41 = vadd.f32 %v3168_v28, %v1012_v6 }
 0x178   : > { %v1102_v19 = vpop.f32.mrf.mxu2  ;;  %v1061_v39 = vpop.f32.mrf.mxu1 }
 0x179   : > { %v1103_v38 = vadd.f32 %v1102_v19, %v1054_v16  ;;  %v1062_v48 = vadd.f32 %v1061_v39, %v1013_v41  ;;  %v1224_v41 = vld [vmem:[%s3622_s4] sm:$0x3] }
 0x17a   : > { %v1151_v9 = vpop.f32.mrf.mxu3 }
 0x17b   : > { %v1152_v4 = vadd.f32 %v1151_v9, %v1103_v38 }
 0x17d   : > { %v1187_v22 = vmax.f32 %v1152_v4, 0.0 }
 0x17e   : > { %v1014_v8 = vpop.f32.mrf.mxu0 }
 0x17f   : > { %v1201_v42 = vpack.c.bf16 %v1187_v22, %v1186_v21  ;;  %v1015_v49 = vadd.f32 %v3168_v28, %v1014_v8  ;;  %v3257_v8 = vperm.slane %v1224_v41, 1 }
 0x180   : > { %v1105_v11 = vpop.f32.mrf.mxu2  ;;  %v1063_v52 = vpop.f32.mrf.mxu1 }
 0x181   : > { %1323 = vmatmul.bf16.gmra.mxu0 %v1201_v42  ;;  %1372 = vmatmul.bf16.gmra.mxu1 %v1201_v42  ;;  %v1106_v15 = vadd.f32 %v1105_v11, %v1057_v26  ;;  %v1064_v53 = vadd.f32 %v1063_v52, %v1015_v49 }
 0x182   : > { %v1154_v63 = vpop.f32.mrf.mxu3 }
 0x183   : > { %v1155_v50 = vadd.f32 %v1154_v63, %v1106_v15 }
 0x185   : > { %v1188_v45 = vmax.f32 %v1155_v50, 0.0 }
 0x188   : > { %v1107_v34 = vpop.f32.mrf.mxu2 }
 0x189   : > { %v1108_v36 = vadd.f32 %v1107_v34, %v1059_v31 }
 0x18a   : > { %v1156_v43 = vpop.f32.mrf.mxu3 }
 0x18b   : > { %v1157_v60 = vadd.f32 %v1156_v43, %v1108_v36 }
 0x18d   : > { %v1189_v12 = vmax.f32 %v1157_v60, 0.0 }
 0x18f   : > { %v1202_v18 = vpack.c.bf16 %v1189_v12, %v1188_v45 }
 0x190   : > { %v1110_v44 = vpop.f32.mrf.mxu2 }
 0x191   : > { %1328 = vmatmul.bf16.gmra.mxu0 %v1202_v18  ;;  %1377 = vmatmul.bf16.gmra.mxu1 %v1202_v18  ;;  %v1111_v51 = vadd.f32 %v1110_v44, %v1062_v48  ;;  %v3255_v18 = vperm.slane %v1224_v41, 0 }
 0x192   : > { %v1159_v47 = vpop.f32.mrf.mxu3 }
 0x193   : > { %v1160_v55 = vadd.f32 %v1159_v47, %v1111_v51 }
 0x195   : > { %v1190_v59 = vmax.f32 %v1160_v55, 0.0 }
 0x198   : > { %v1112_v54 = vpop.f32.mrf.mxu2 }
 0x199   : > { %v1113_v56 = vadd.f32 %v1112_v54, %v1064_v53 }
 0x19a   : > { %v1161_v29 = vpop.f32.mrf.mxu3 }
 0x19b   : > { %v1162_v27 = vadd.f32 %v1161_v29, %v1113_v56 }
 0x19d   : > { %v1191_v61 = vmax.f32 %v1162_v27, 0.0 }
 0x19f   : > { %v1203_v0 = vpack.c.bf16 %v1191_v61, %v1190_v59 }
 0x1a0   : > { %v1115_v1 = vpop.f32.mrf.mxu2 }
 0x1a1   : > { %1333 = vmatmul.bf16.gmra.mxu0 %v1203_v0  ;;  %1382 = vmatmul.bf16.gmra.mxu1 %v1203_v0  ;;  %v1116_v33 = vadd.f32 %v1115_v1, %v3177_v32 }
 0x1a2   : > { %v1164_v35 = vpop.f32.mrf.mxu3 }
 0x1a3   : > { %v1165_v5 = vadd.f32 %v1164_v35, %v1116_v33 }
 0x1a5   : > { %v1192_v13 = vmax.f32 %v1165_v5, 0.0 }
 0x1a8   : > { %v1117_v2 = vpop.f32.mrf.mxu2 }
 0x1a9   : > { %v1118_v28 = vadd.f32 %v1117_v2, %v3180_v46 }
 0x1aa   : > { %v1166_v7 = vpop.f32.mrf.mxu3 }
 0x1ab   : > { %v1167_v10 = vadd.f32 %v1166_v7, %v1118_v28 }
 0x1ad   : > { %v1193_v14 = vmax.f32 %v1167_v10, 0.0 }
 0x1af   : > { %v1204_v16 = vpack.c.bf16 %v1193_v14, %v1192_v13 }
 0x1b0   : > { %v1120_v17 = vpop.f32.mrf.mxu2 }
 0x1b1   : > { %1338 = vmatmul.bf16.gmra.mxu0 %v1204_v16  ;;  %1387 = vmatmul.bf16.gmra.mxu1 %v1204_v16  ;;  %v1121_v58 = vadd.f32 %v1120_v17, %v3195_v57 }
 0x1b2   : > { %v1169_v19 = vpop.f32.mrf.mxu3 }
 0x1b3   : > { %v1170_v9 = vadd.f32 %v1169_v19, %v1121_v58 }
 0x1b5   : > { %v1194_v21 = vmax.f32 %v1170_v9, 0.0 }
 0x1b8   : > { %v1122_v38 = vpop.f32.mrf.mxu2 }
 0x1b9   : > { %v1123_v4 = vadd.f32 %v1122_v38, %v3198_v3 }
 0x1ba   : > { %v1171_v32 = vpop.f32.mrf.mxu3 }
 0x1bb   : > { %v1172_v20 = vadd.f32 %v1171_v32, %v1123_v4 }
 0x1bd   : > { %v1195_v22 = vmax.f32 %v1172_v20, 0.0 }
 0x1bf   : > { %v1205_v46 = vpack.c.bf16 %v1195_v22, %v1194_v21 }
 0x1c0   : > { %v1125_v23 = vpop.f32.mrf.mxu2 }
 0x1c1   : > { %1343 = vmatmul.bf16.gmra.mxu0 %v1205_v46  ;;  %1392 = vmatmul.bf16.gmra.mxu1 %v1205_v46  ;;  %v1126_v11 = vadd.f32 %v1125_v23, %v3213_v62 }
 0x1c2   : > { %v1174_v42 = vpop.f32.mrf.mxu3 }
 0x1c3   : > { %v1175_v63 = vadd.f32 %v1174_v42, %v1126_v11 }
 0x1c5   : > { %v1196_v15 = vmax.f32 %v1175_v63, 0.0 }
 0x1c8   : > { %v1127_v25 = vpop.f32.mrf.mxu2 }
 0x1c9   : > { %v1128_v26 = vadd.f32 %v1127_v25, %v3216_v24 }
 0x1ca   : > { %v1176_v57 = vpop.f32.mrf.mxu3 }
 0x1cb   : > { %v1177_v30 = vadd.f32 %v1176_v57, %v1128_v26 }
 0x1cd   : > { %v1197_v6 = vmax.f32 %v1177_v30, 0.0 }
 0x1cf   : > { %v1206_v3 = vpack.c.bf16 %v1197_v6, %v1196_v15 }
 0x1d0   : > { %v1130_v31 = vpop.f32.mrf.mxu2 }
 0x1d1   : > { %1348 = vmatmul.bf16.gmra.mxu0 %v1206_v3  ;;  %1397 = vmatmul.bf16.gmra.mxu1 %v1206_v3  ;;  %v1131_v50 = vadd.f32 %v1130_v31, %v3231_v37 }
 0x1d2   : > { %v1179_v34 = vpop.f32.mrf.mxu3 }
 0x1d3   : > { %v1180_v43 = vadd.f32 %v1179_v34, %v1131_v50 }
 0x1d5   : > { %v1198_v45 = vmax.f32 %v1180_v43, 0.0 }
 0x1d8   : > { %v1132_v36 = vpop.f32.mrf.mxu2 }
 0x1d9   : > { %v1133_v60 = vadd.f32 %v1132_v36, %v3234_v40 }
 0x1da   : > { %v1181_v62 = vpop.f32.mrf.mxu3 }
 0x1db   : > { %v1182_v39 = vadd.f32 %v1181_v62, %v1133_v60 }
 0x1dd   : > { %v1199_v12 = vmax.f32 %v1182_v39, 0.0 }
 0x1df   : > { %v1207_v24 = vpack.c.bf16 %v1199_v12, %v1198_v45 }
 0x1e1   : > { %1353 = vmatmul.bf16.gmra.mxu0 %v1207_v24  ;;  %1402 = vmatmul.bf16.gmra.mxu1 %v1207_v24 }
 0x1ee   : > { %v1319_v37 = vpop.f32.mrf.mxu0  ;;  %v1368_v44 = vpop.f32.mrf.mxu1 }
 0x1ef   : > { %v3260_v47 = vadd.f32 %v1319_v37, %v3255_v18  ;;  %v3263_v40 = vadd.f32 %v1368_v44, %v3257_v8 }
 0x1f1   : > { %v1408_v48 = vmax.f32 %v3260_v47, %v3263_v40 }
 0x1f3   : > { %1409 = vmax.xlane.f32.xlu2 %v1408_v48 }
 0x1f6   : > { %v1321_v49 = vpop.f32.mrf.mxu0  ;;  %v1370_v51 = vpop.f32.mrf.mxu1 }
 0x1f7   : > { %v3268_v52 = vadd.f32 %v1321_v49, %v3255_v18  ;;  %v3271_v53 = vadd.f32 %v1370_v51, %v3257_v8 }
 0x1f9   : > { %v1411_v54 = vmax.f32 %v3268_v52, %v3271_v53 }
 0x1fb   : > { %1412 = vmax.xlane.f32.xlu0 %v1411_v54 }
 0x1fe   : > { %v1324_v55 = vpop.f32.mrf.mxu0  ;;  %v1373_v56 = vpop.f32.mrf.mxu1 }
 0x1ff   : > { %v3276_v29 = vadd.f32 %v1324_v55, %v3255_v18  ;;  %v3279_v27 = vadd.f32 %v1373_v56, %v3257_v8 }
 0x201   : > { %v1414_v59 = vmax.f32 %v3276_v29, %v3279_v27 }
 0x203   : > { %1415 = vmax.xlane.f32.xlu1 %v1414_v59 }
 0x206   : > { %v1326_v61 = vpop.f32.mrf.mxu0  ;;  %v1375_v0 = vpop.f32.mrf.mxu1 }
 0x207   : > { %v3284_v1 = vadd.f32 %v1326_v61, %v3255_v18  ;;  %v3287_v35 = vadd.f32 %v1375_v0, %v3257_v8 }
 0x209   : > { %v1417_v33 = vmax.f32 %v3284_v1, %v3287_v35 }
 0x20b   : > { %1418 = vmax.xlane.f32.xlu2 %v1417_v33 }
 0x20e   : > { %v1329_v2 = vpop.f32.mrf.mxu0  ;;  %v1378_v5 = vpop.f32.mrf.mxu1 }
 0x20f   : > { %v3292_v28 = vadd.f32 %v1329_v2, %v3255_v18  ;;  %v3295_v7 = vadd.f32 %v1378_v5, %v3257_v8 }
 0x211   : > { %v1420_v10 = vmax.f32 %v3292_v28, %v3295_v7 }
 0x213   : > { %1421 = vmax.xlane.f32.xlu2 %v1420_v10 }
 0x216   : > { %v1331_v13 = vpop.f32.mrf.mxu0  ;;  %v1380_v14 = vpop.f32.mrf.mxu1 }
 0x217   : > { %v3300_v16 = vadd.f32 %v1331_v13, %v3255_v18  ;;  %v3303_v17 = vadd.f32 %v1380_v14, %v3257_v8 }
 0x219   : > { %v1423_v19 = vmax.f32 %v3300_v16, %v3303_v17 }
 0x21b   : > { %1424 = vmax.xlane.f32.xlu0 %v1423_v19 }
 0x21e   : > { %v1334_v58 = vpop.f32.mrf.mxu0  ;;  %v1383_v38 = vpop.f32.mrf.mxu1 }
 0x21f   : > { %v3308_v9 = vadd.f32 %v1334_v58, %v3255_v18  ;;  %v3311_v4 = vadd.f32 %v1383_v38, %v3257_v8 }
 0x221   : > { %v1426_v32 = vmax.f32 %v3308_v9, %v3311_v4 }
 0x223   : > { %1427 = vmax.xlane.f32.xlu1 %v1426_v32 }
 0x226   : > { %v1336_v20 = vpop.f32.mrf.mxu0  ;;  %v1385_v21 = vpop.f32.mrf.mxu1 }
 0x227   : > { %v3316_v22 = vadd.f32 %v1336_v20, %v3255_v18  ;;  %v3319_v46 = vadd.f32 %v1385_v21, %v3257_v8 }
 0x229   : > { %v1429_v23 = vmax.f32 %v3316_v22, %v3319_v46 }
 0x22b   : > { %1430 = vmax.xlane.f32.xlu2 %v1429_v23 }
 0x22e   : > { %v1339_v42 = vpop.f32.mrf.mxu0  ;;  %v1388_v11 = vpop.f32.mrf.mxu1 }
 0x22f   : > { %v3324_v25 = vadd.f32 %v1339_v42, %v3255_v18  ;;  %v3327_v63 = vadd.f32 %v1388_v11, %v3257_v8 }
 0x231   : > { %v1432_v26 = vmax.f32 %v3324_v25, %v3327_v63 }
 0x233   : > { %1433 = vmax.xlane.f32.xlu0 %v1432_v26 }
 0x236   : > { %v1341_v57 = vpop.f32.mrf.mxu0  ;;  %v1390_v30 = vpop.f32.mrf.mxu1 }
 0x237   : > { %v3332_v15 = vadd.f32 %v1341_v57, %v3255_v18  ;;  %v3335_v6 = vadd.f32 %v1390_v30, %v3257_v8 }
 0x239   : > { %v1435_v3 = vmax.f32 %v3332_v15, %v3335_v6 }
 0x23b   : > { %1436 = vmax.xlane.f32.xlu1 %v1435_v3 }
 0x23e   : > { %v1344_v31 = vpop.f32.mrf.mxu0  ;;  %v1393_v34 = vpop.f32.mrf.mxu1 }
 0x23f   : > { %v3340_v50 = vadd.f32 %v1344_v31, %v3255_v18  ;;  %v3343_v36 = vadd.f32 %v1393_v34, %v3257_v8 }
 0x241   : > { %v1438_v43 = vmax.f32 %v3340_v50, %v3343_v36 }
 0x243   : > { %1439 = vmax.xlane.f32.xlu2 %v1438_v43 }
 0x246   : > { %v1346_v60 = vpop.f32.mrf.mxu0  ;;  %v1395_v62 = vpop.f32.mrf.mxu1 }
 0x247   : > { %v3348_v39 = vadd.f32 %v1346_v60, %v3255_v18  ;;  %v3351_v45 = vadd.f32 %v1395_v62, %v3257_v8 }
 0x249   : > { %v1441_v12 = vmax.f32 %v3348_v39, %v3351_v45 }
 0x24b   : > { %1442 = vmax.xlane.f32.xlu0 %v1441_v12 }
 0x24e   : > { %v1349_v24 = vpop.f32.mrf.mxu0  ;;  %v1398_v41 = vpop.f32.mrf.mxu1 }
 0x24f   : > { %v3356_v37 = vadd.f32 %v1349_v24, %v3255_v18  ;;  %v3359_v44 = vadd.f32 %v1398_v41, %v3257_v8 }
 0x251   : > { %v1444_v48 = vmax.f32 %v3356_v37, %v3359_v44 }
 0x253   : > { %1445 = vmax.xlane.f32.xlu1 %v1444_v48 }
 0x256   : > { %v1351_v49 = vpop.f32.mrf.mxu0  ;;  %v1400_v51 = vpop.f32.mrf.mxu1 }
 0x257   : > { %v3364_v54 = vadd.f32 %v1351_v49, %v3255_v18  ;;  %v3367_v55 = vadd.f32 %v1400_v51, %v3257_v8 }
 0x259   : > { %v1447_v56 = vmax.f32 %v3364_v54, %v3367_v55 }
 0x25b   : > { %1448 = vmax.xlane.f32.xlu2 %v1447_v56 }
 0x25e   : > { %v1354_v59 = vpop.f32.mrf.mxu0  ;;  %v1403_v61 = vpop.f32.mrf.mxu1 }
 0x25f   : > { %v3372_v0 = vadd.f32 %v1354_v59, %v3255_v18  ;;  %v3375_v33 = vadd.f32 %v1403_v61, %v3257_v8 }
 0x261   : > { %v1450_v2 = vmax.f32 %v3372_v0, %v3375_v33 }
 0x263   : > { %1451 = vmax.xlane.f32.xlu0 %v1450_v2 }
 0x266   : > { %v1410_v5 = vpop.xlane.xlu2 %1409  ;;  %v1356_v10 = vpop.f32.mrf.mxu0 }
 0x267   : > { %v3380_v13 = vsub.f32 %v3260_v47, %v1410_v5  ;;  %v3383_v14 = vsub.f32 %v3263_v40, %v1410_v5  ;;  %v3386_v19 = vadd.f32 %v1356_v10, %v3255_v18  ;;  %v1405_v58 = vpop.f32.mrf.mxu1 }
 0x268   : > { %v3389_v38 = vadd.f32 %v1405_v58, %v3257_v8 }
 0x269   : > { %v1488_v32 = vmul.f32 1.442695, %v3380_v13  ;;  %v1490_v20 = vmul.f32 1.442695, %v3383_v14 }
 0x26a   : > { %v1453_v21 = vmax.f32 %v3386_v19, %v3389_v38 }
 0x26b   : > { %2264 = vpow2.f32 %v1488_v32 }
 0x26c   : > { %2266 = vpow2.f32 %v1490_v20  ;;  %1454 = vmax.xlane.f32.xlu1 %v1453_v21 }
 0x26e   : > { %v1413_v47 = vpop.xlane.xlu0 %1412 }
 0x26f   : > { %v3396_v40 = vsub.f32 %v3268_v52, %v1413_v47  ;;  %v3399_v18 = vsub.f32 %v3271_v53, %v1413_v47 }
 0x271   : > { %v2265_v23 = vpop.eup %2264  ;;  %v1492_v8 = vmul.f32 1.442695, %v3396_v40  ;;  %v1494_v42 = vmul.f32 1.442695, %v3399_v18 }
 0x272   : > { %v2267_v11 = vpop.eup %2266 }
 0x273   : > { %2268 = vpow2.f32 %v1492_v8  ;;  %v1552_v26 = vadd.f32 %v2267_v11, %v2265_v23 }
 0x274   : > { %2270 = vpow2.f32 %v1494_v42 }
 0x275   : > { %1553 = vadd.xlane.f32.xlu2 %v1552_v26 }
 0x276   : > { %v1416_v57 = vpop.xlane.xlu1 %1415 }
 0x277   : > { %v3404_v30 = vsub.f32 %v3276_v29, %v1416_v57  ;;  %v3407_v52 = vsub.f32 %v3279_v27, %v1416_v57 }
 0x279   : > { %v2269_v3 = vpop.eup %2268  ;;  %v1496_v53 = vmul.f32 1.442695, %v3404_v30  ;;  %v1498_v31 = vmul.f32 1.442695, %v3407_v52 }
 0x27a   : > { %v2271_v34 = vpop.eup %2270 }
 0x27b   : > { %2272 = vpow2.f32 %v1496_v53  ;;  %v1555_v43 = vadd.f32 %v2271_v34, %v2269_v3 }
 0x27c   : > { %2274 = vpow2.f32 %v1498_v31 }
 0x27d   : > { %1556 = vadd.xlane.f32.xlu0 %v1555_v43 }
 0x27e   : > { %v1419_v60 = vpop.xlane.xlu2 %1418 }
 0x27f   : > { %v3412_v62 = vsub.f32 %v3284_v1, %v1419_v60  ;;  %v3415_v29 = vsub.f32 %v3287_v35, %v1419_v60 }
 0x281   : > { %v2273_v12 = vpop.eup %2272  ;;  %v1500_v27 = vmul.f32 1.442695, %v3412_v62  ;;  %v1502_v24 = vmul.f32 1.442695, %v3415_v29 }
 0x282   : > { %v2275_v41 = vpop.eup %2274 }
 0x283   : > { %2276 = vpow2.f32 %v1500_v27  ;;  %v1558_v48 = vadd.f32 %v2275_v41, %v2273_v12 }
 0x284   : > { %2278 = vpow2.f32 %v1502_v24 }
 0x285   : > { %1559 = vadd.xlane.f32.xlu1 %v1558_v48 }
 0x286   : > { %v1422_v49 = vpop.xlane.xlu2 %1421 }
 0x287   : > { %v3420_v51 = vsub.f32 %v3292_v28, %v1422_v49  ;;  %v3423_v1 = vsub.f32 %v3295_v7, %v1422_v49 }
 0x289   : > { %v2277_v56 = vpop.eup %2276  ;;  %v1504_v35 = vmul.f32 1.442695, %v3420_v51  ;;  %v1506_v59 = vmul.f32 1.442695, %v3423_v1 }
 0x28a   : > { %v2279_v61 = vpop.eup %2278 }
 0x28b   : > { %2280 = vpow2.f32 %v1504_v35  ;;  %v1561_v2 = vadd.f32 %v2279_v61, %v2277_v56 }
 0x28c   : > { %2282 = vpow2.f32 %v1506_v59 }
 0x28d   : > { %1562 = vadd.xlane.f32.xlu2 %v1561_v2 }
 0x28e   : > { %v1425_v5 = vpop.xlane.xlu0 %1424 }
 0x28f   : > { %v3428_v10 = vsub.f32 %v3300_v16, %v1425_v5  ;;  %v3431_v28 = vsub.f32 %v3303_v17, %v1425_v5 }
 0x291   : > { %v2281_v58 = vpop.eup %2280  ;;  %v1508_v7 = vmul.f32 1.442695, %v3428_v10  ;;  %v1510_v32 = vmul.f32 1.442695, %v3431_v28 }
 0x292   : > { %v2283_v20 = vpop.eup %2282 }
 0x293   : > { %2284 = vpow2.f32 %v1508_v7  ;;  %v1564_v21 = vadd.f32 %v2283_v20, %v2281_v58 }
 0x294   : > { %2286 = vpow2.f32 %v1510_v32 }
 0x295   : > { %1565 = vadd.xlane.f32.xlu0 %v1564_v21 }
 0x296   : > { %v1428_v47 = vpop.xlane.xlu1 %1427 }
 0x297   : > { %v3436_v23 = vsub.f32 %v3308_v9, %v1428_v47  ;;  %v3439_v16 = vsub.f32 %v3311_v4, %v1428_v47 }
 0x299   : > { %v2285_v8 = vpop.eup %2284  ;;  %v1512_v17 = vmul.f32 1.442695, %v3436_v23  ;;  %v1514_v42 = vmul.f32 1.442695, %v3439_v16 }
 0x29a   : > { %v2287_v11 = vpop.eup %2286 }
 0x29b   : > { %2288 = vpow2.f32 %v1512_v17  ;;  %v1567_v26 = vadd.f32 %v2287_v11, %v2285_v8 }
 0x29c   : > { %2290 = vpow2.f32 %v1514_v42 }
 0x29d   : > { %1568 = vadd.xlane.f32.xlu1 %v1567_v26 }
 0x29e   : > { %v1431_v57 = vpop.xlane.xlu2 %1430 }
 0x29f   : > { %v3444_v3 = vsub.f32 %v3316_v22, %v1431_v57  ;;  %v3447_v9 = vsub.f32 %v3319_v46, %v1431_v57 }
 0x2a1   : > { %v2289_v53 = vpop.eup %2288  ;;  %v1516_v4 = vmul.f32 1.442695, %v3444_v3  ;;  %v1518_v31 = vmul.f32 1.442695, %v3447_v9 }
 0x2a2   : > { %v2291_v34 = vpop.eup %2290 }
 0x2a3   : > { %2292 = vpow2.f32 %v1516_v4  ;;  %v1570_v43 = vadd.f32 %v2291_v34, %v2289_v53 }
 0x2a4   : > { %2294 = vpow2.f32 %v1518_v31 }
 0x2a5   : > { %1571 = vadd.xlane.f32.xlu2 %v1570_v43 }
 0x2a6   : > { %v1434_v60 = vpop.xlane.xlu0 %1433 }
 0x2a7   : > { %v3452_v12 = vsub.f32 %v3324_v25, %v1434_v60  ;;  %v3455_v22 = vsub.f32 %v3327_v63, %v1434_v60 }
 0x2a9   : > { %v2293_v27 = vpop.eup %2292  ;;  %v1520_v46 = vmul.f32 1.442695, %v3452_v12  ;;  %v1522_v24 = vmul.f32 1.442695, %v3455_v22 }
 0x2aa   : > { %v2295_v41 = vpop.eup %2294 }
 0x2ab   : > { %2296 = vpow2.f32 %v1520_v46  ;;  %v1573_v48 = vadd.f32 %v2295_v41, %v2293_v27 }
 0x2ac   : > { %2298 = vpow2.f32 %v1522_v24 }
 0x2ad   : > { %1574 = vadd.xlane.f32.xlu0 %v1573_v48 }
 0x2ae   : > { %v1437_v49 = vpop.xlane.xlu1 %1436 }
 0x2af   : > { %v3460_v56 = vsub.f32 %v3332_v15, %v1437_v49  ;;  %v3463_v25 = vsub.f32 %v3335_v6, %v1437_v49 }
 0x2b1   : > { %v2297_v35 = vpop.eup %2296  ;;  %v1524_v63 = vmul.f32 1.442695, %v3460_v56  ;;  %v1526_v59 = vmul.f32 1.442695, %v3463_v25 }
 0x2b2   : > { %v2299_v61 = vpop.eup %2298 }
 0x2b3   : > { %2300 = vpow2.f32 %v1524_v63  ;;  %v1576_v2 = vadd.f32 %v2299_v61, %v2297_v35 }
 0x2b4   : > { %2302 = vpow2.f32 %v1526_v59 }
 0x2b5   : > { %1577 = vadd.xlane.f32.xlu1 %v1576_v2 }
 0x2b6   : > { %v1440_v5 = vpop.xlane.xlu2 %1439 }
 0x2b7   : > { %v3468_v58 = vsub.f32 %v3340_v50, %v1440_v5  ;;  %v3471_v15 = vsub.f32 %v3343_v36, %v1440_v5 }
 0x2b9   : > { %v2301_v7 = vpop.eup %2300  ;;  %v1528_v6 = vmul.f32 1.442695, %v3468_v58  ;;  %v1530_v32 = vmul.f32 1.442695, %v3471_v15 }
 0x2ba   : > { %v2303_v20 = vpop.eup %2302 }
 0x2bb   : > { %2304 = vpow2.f32 %v1528_v6  ;;  %v1579_v21 = vadd.f32 %v2303_v20, %v2301_v7 }
 0x2bc   : > { %2306 = vpow2.f32 %v1530_v32 }
 0x2bd   : > { %1580 = vadd.xlane.f32.xlu2 %v1579_v21 }
 0x2be   : > { %v1443_v47 = vpop.xlane.xlu0 %1442 }
 0x2bf   : > { %v3476_v8 = vsub.f32 %v3348_v39, %v1443_v47  ;;  %v3479_v50 = vsub.f32 %v3351_v45, %v1443_v47 }
 0x2c1   : > { %v2305_v17 = vpop.eup %2304  ;;  %v1532_v36 = vmul.f32 1.442695, %v3476_v8  ;;  %v1534_v42 = vmul.f32 1.442695, %v3479_v50 }
 0x2c2   : > { %v2307_v11 = vpop.eup %2306 }
 0x2c3   : > { %2308 = vpow2.f32 %v1532_v36  ;;  %v1582_v26 = vadd.f32 %v2307_v11, %v2305_v17 }
 0x2c4   : > { %2310 = vpow2.f32 %v1534_v42 }
 0x2c5   : > { %1583 = vadd.xlane.f32.xlu0 %v1582_v26 }
 0x2c6   : > { %v1446_v57 = vpop.xlane.xlu1 %1445 }
 0x2c7   : > { %v3484_v53 = vsub.f32 %v3356_v37, %v1446_v57  ;;  %v3487_v39 = vsub.f32 %v3359_v44, %v1446_v57 }
 0x2c9   : > { %v2309_v4 = vpop.eup %2308  ;;  %v1536_v45 = vmul.f32 1.442695, %v3484_v53  ;;  %v1538_v31 = vmul.f32 1.442695, %v3487_v39 }
 0x2ca   : > { %v2311_v34 = vpop.eup %2310 }
 0x2cb   : > { %2312 = vpow2.f32 %v1536_v45  ;;  %v1585_v43 = vadd.f32 %v2311_v34, %v2309_v4 }
 0x2cc   : > { %2314 = vpow2.f32 %v1538_v31 }
 0x2cd   : > { %1586 = vadd.xlane.f32.xlu1 %v1585_v43 }
 0x2ce   : > { %v1449_v60 = vpop.xlane.xlu2 %1448 }
 0x2cf   : > { %v3492_v27 = vsub.f32 %v3364_v54, %v1449_v60  ;;  %v3495_v37 = vsub.f32 %v3367_v55, %v1449_v60 }
 0x2d1   : > { %v2313_v46 = vpop.eup %2312  ;;  %v1540_v44 = vmul.f32 1.442695, %v3492_v27  ;;  %v1542_v24 = vmul.f32 1.442695, %v3495_v37 }
 0x2d2   : > { %v2315_v41 = vpop.eup %2314 }
 0x2d3   : > { %2316 = vpow2.f32 %v1540_v44  ;;  %v1588_v48 = vadd.f32 %v2315_v41, %v2313_v46 }
 0x2d4   : > { %2318 = vpow2.f32 %v1542_v24 }
 0x2d5   : > { %1589 = vadd.xlane.f32.xlu2 %v1588_v48 }
 0x2d6   : > { %v1452_v49 = vpop.xlane.xlu0 %1451 }
 0x2d7   : > { %v3500_v35 = vsub.f32 %v3372_v0, %v1452_v49  ;;  %v3503_v54 = vsub.f32 %v3375_v33, %v1452_v49 }
 0x2d9   : > { %v2317_v63 = vpop.eup %2316  ;;  %v1544_v55 = vmul.f32 1.442695, %v3500_v35  ;;  %v1546_v59 = vmul.f32 1.442695, %v3503_v54 }
 0x2da   : > { %v2319_v61 = vpop.eup %2318 }
 0x2db   : > { %2320 = vpow2.f32 %v1544_v55  ;;  %v1591_v2 = vadd.f32 %v2319_v61, %v2317_v63 }
 0x2dc   : > { %2322 = vpow2.f32 %v1546_v59 }
 0x2dd   : > { %1592 = vadd.xlane.f32.xlu0 %v1591_v2 }
 0x2df   : > { %v1455_v5 = vpop.xlane.xlu1 %1454 }
 0x2e0   : > { %v3508_v7 = vsub.f32 %v3386_v19, %v1455_v5  ;;  %v3511_v0 = vsub.f32 %v3389_v38, %v1455_v5 }
 0x2e1   : > { %v2321_v33 = vpop.eup %2320 }
 0x2e2   : > { %v2323_v6 = vpop.eup %2322  ;;  %v1548_v32 = vmul.f32 1.442695, %v3508_v7  ;;  %v1550_v20 = vmul.f32 1.442695, %v3511_v0 }
 0x2e3   : > { %v1594_v21 = vadd.f32 %v2323_v6, %v2321_v33 }
 0x2e4   : > { %2324 = vpow2.f32 %v1548_v32 }
 0x2e5   : > { %2326 = vpow2.f32 %v1550_v20  ;;  %1595 = vadd.xlane.f32.xlu1 %v1594_v21 }
 0x2e8   : > { %v1554_v47 = vpop.xlane.xlu2 %1553 }
 0x2e9   : > { %2328 = vlog2.f32 %v1554_v47 }
 0x2ea   : > { %v2325_v17 = vpop.eup %2324 }
 0x2eb   : > { %v2327_v36 = vpop.eup %2326 }
 0x2ec   : > { %v1597_v19 = vadd.f32 %v2327_v36, %v2325_v17 }
 0x2ee   : > { %1598 = vadd.xlane.f32.xlu2 %v1597_v19 }
 0x2ef   : > { %v2329_v38 = vpop.eup %2328 }
 0x2f0   : > { %v1601_v42 = vmul.f32 0.6931472, %v2329_v38  ;;  %v1557_v11 = vpop.xlane.xlu0 %1556 }
 0x2f1   : > { %2330 = vlog2.f32 %v1557_v11 }
 0x2f2   : > { %v1632_v26 = vsub.f32 %v3380_v13, %v1601_v42  ;;  %v1633_v57 = vsub.f32 %v3383_v14, %v1601_v42 }
 0x2f4   : > { %1664 = vst [vmem:[%s3520_s8] sm:$0xff] %v1632_v26 }
 0x2f5   : > { %1665 = vst [vmem:[%s3520_s8 + $0x8] sm:$0xff] %v1633_v57 }
 0x2f7   : > { %v2331_v4 = vpop.eup %2330 }
 0x2f8   : > { %v1603_v45 = vmul.f32 0.6931472, %v2331_v4  ;;  %v1560_v31 = vpop.xlane.xlu1 %1559 }
 0x2f9   : > { %2332 = vlog2.f32 %v1560_v31 }
 0x2fa   : > { %v1634_v34 = vsub.f32 %v3396_v40, %v1603_v45  ;;  %v1635_v13 = vsub.f32 %v3399_v18, %v1603_v45 }
 0x2fc   : > { %1666 = vst [vmem:[%s3520_s8 + $0x10] sm:$0xff] %v1634_v34 }
 0x2fd   : > { %1667 = vst [vmem:[%s3520_s8 + $0x18] sm:$0xff] %v1635_v13 }
 0x2ff   : > { %v2333_v14 = vpop.eup %2332 }
 0x300   : > { %v1605_v43 = vmul.f32 0.6931472, %v2333_v14  ;;  %v1563_v60 = vpop.xlane.xlu2 %1562 }
 0x301   : > { %2334 = vlog2.f32 %v1563_v60 }
 0x302   : > { %v1636_v46 = vsub.f32 %v3404_v30, %v1605_v43  ;;  %v1637_v44 = vsub.f32 %v3407_v52, %v1605_v43 }
 0x304   : > { %1668 = vst [vmem:[%s3520_s8 + $0x20] sm:$0xff] %v1636_v46 }
 0x305   : > { %1669 = vst [vmem:[%s3520_s8 + $0x28] sm:$0xff] %v1637_v44 }
 0x307   : > { %v2335_v24 = vpop.eup %2334 }
 0x308   : > { %v1607_v40 = vmul.f32 0.6931472, %v2335_v24  ;;  %v1566_v41 = vpop.xlane.xlu0 %1565 }
 0x309   : > { %2336 = vlog2.f32 %v1566_v41 }
 0x30a   : > { %v1638_v18 = vsub.f32 %v3412_v62, %v1607_v40  ;;  %v1639_v48 = vsub.f32 %v3415_v29, %v1607_v40 }
 0x30c   : > { %1670 = vst [vmem:[%s3520_s8 + $0x30] sm:$0xff] %v1638_v18 }
 0x30d   : > { %1671 = vst [vmem:[%s3520_s8 + $0x38] sm:$0xff] %v1639_v48 }
 0x30f   : > { %v2337_v49 = vpop.eup %2336 }
 0x310   : > { %v1609_v30 = vmul.f32 0.6931472, %v2337_v49  ;;  %v1569_v63 = vpop.xlane.xlu1 %1568 }
 0x311   : > { %2338 = vlog2.f32 %v1569_v63 }
 0x312   : > { %v1640_v52 = vsub.f32 %v3420_v51, %v1609_v30  ;;  %v1641_v55 = vsub.f32 %v3423_v1, %v1609_v30 }
 0x314   : > { %1672 = vst [vmem:[%s3520_s8 + $0x40] sm:$0xff] %v1640_v52 }
 0x315   : > { %1673 = vst [vmem:[%s3520_s8 + $0x48] sm:$0xff] %v1641_v55 }
 0x317   : > { %v2339_v59 = vpop.eup %2338 }
 0x318   : > { %v1611_v62 = vmul.f32 0.6931472, %v2339_v59  ;;  %v1572_v61 = vpop.xlane.xlu2 %1571 }
 0x319   : > { %2340 = vlog2.f32 %v1572_v61 }
 0x31a   : > { %v1642_v29 = vsub.f32 %v3428_v10, %v1611_v62  ;;  %v1643_v2 = vsub.f32 %v3431_v28, %v1611_v62 }
 0x31c   : > { %1674 = vst [vmem:[%s3520_s8 + $0x50] sm:$0xff] %v1642_v29 }
 0x31d   : > { %1675 = vst [vmem:[%s3520_s8 + $0x58] sm:$0xff] %v1643_v2 }
 0x31f   : > { %v2341_v5 = vpop.eup %2340 }
 0x320   : > { %v1613_v51 = vmul.f32 0.6931472, %v2341_v5  ;;  %v1575_v33 = vpop.xlane.xlu0 %1574 }
 0x321   : > { %2342 = vlog2.f32 %v1575_v33 }
 0x322   : > { %v1644_v1 = vsub.f32 %v3436_v23, %v1613_v51  ;;  %v1645_v6 = vsub.f32 %v3439_v16, %v1613_v51 }
 0x324   : > { %1676 = vst [vmem:[%s3520_s8 + $0x60] sm:$0xff] %v1644_v1 }
 0x325   : > { %1677 = vst [vmem:[%s3520_s8 + $0x68] sm:$0xff] %v1645_v6 }
 0x327   : > { %v2343_v32 = vpop.eup %2342 }
 0x328   : > { %v1615_v10 = vmul.f32 0.6931472, %v2343_v32  ;;  %v1578_v20 = vpop.xlane.xlu1 %1577 }
 0x329   : > { %2344 = vlog2.f32 %v1578_v20 }
 0x32a   : > { %v1646_v28 = vsub.f32 %v3444_v3, %v1615_v10  ;;  %v1647_v21 = vsub.f32 %v3447_v9, %v1615_v10 }
 0x32c   : > { %1678 = vst [vmem:[%s3520_s8 + $0x70] sm:$0xff] %v1646_v28 }
 0x32d   : > { %1679 = vst [vmem:[%s3520_s8 + $0x78] sm:$0xff] %v1647_v21 }
 0x32f   : > { %v2345_v47 = vpop.eup %2344 }
 0x330   : > { %v1617_v23 = vmul.f32 0.6931472, %v2345_v47  ;;  %v1581_v17 = vpop.xlane.xlu2 %1580 }
 0x331   : > { %2346 = vlog2.f32 %v1581_v17 }
 0x332   : > { %v1648_v16 = vsub.f32 %v3452_v12, %v1617_v23  ;;  %v1649_v36 = vsub.f32 %v3455_v22, %v1617_v23 }
 0x334   : > { %1680 = vst [vmem:[%s3520_s8 + $0x80] sm:$0xff] %v1648_v16 }
 0x335   : > { %1681 = vst [vmem:[%s3520_s8 + $0x88] sm:$0xff] %v1649_v36 }
 0x337   : > { %v2347_v19 = vpop.eup %2346 }
 0x338   : > { %v1619_v3 = vmul.f32 0.6931472, %v2347_v19  ;;  %v1584_v38 = vpop.xlane.xlu0 %1583 }
 0x339   : > { %2348 = vlog2.f32 %v1584_v38 }
 0x33a   : > { %v1650_v9 = vsub.f32 %v3460_v56, %v1619_v3  ;;  %v1651_v42 = vsub.f32 %v3463_v25, %v1619_v3 }
 0x33c   : > { %1682 = vst [vmem:[%s3520_s8 + $0x90] sm:$0xff] %v1650_v9 }
 0x33d   : > { %1683 = vst [vmem:[%s3520_s8 + $0x98] sm:$0xff] %v1651_v42 }
 0x33f   : > { %v2349_v11 = vpop.eup %2348 }
 0x340   : > { %v1621_v12 = vmul.f32 0.6931472, %v2349_v11  ;;  %v1587_v26 = vpop.xlane.xlu1 %1586 }
 0x341   : > { %2350 = vlog2.f32 %v1587_v26 }
 0x342   : > { %v1652_v22 = vsub.f32 %v3468_v58, %v1621_v12  ;;  %v1653_v57 = vsub.f32 %v3471_v15, %v1621_v12 }
 0x344   : > { %1684 = vst [vmem:[%s3520_s8 + $0xa0] sm:$0xff] %v1652_v22 }
 0x345   : > { %1685 = vst [vmem:[%s3520_s8 + $0xa8] sm:$0xff] %v1653_v57 }
 0x347   : > { %v2351_v4 = vpop.eup %2350 }
 0x348   : > { %v1623_v56 = vmul.f32 0.6931472, %v2351_v4  ;;  %v1590_v45 = vpop.xlane.xlu2 %1589 }
 0x349   : > { %2352 = vlog2.f32 %v1590_v45 }
 0x34a   : > { %v1654_v25 = vsub.f32 %v3476_v8, %v1623_v56  ;;  %v1655_v31 = vsub.f32 %v3479_v50, %v1623_v56 }
 0x34c   : > { %1686 = vst [vmem:[%s3520_s8 + $0xb0] sm:$0xff] %v1654_v25 }
 0x34d   : > { %1687 = vst [vmem:[%s3520_s8 + $0xb8] sm:$0xff] %v1655_v31 }
 0x34f   : > { %v2353_v34 = vpop.eup %2352 }
 0x350   : > { %v1625_v58 = vmul.f32 0.6931472, %v2353_v34  ;;  %v1593_v13 = vpop.xlane.xlu0 %1592 }
 0x351   : > { %2354 = vlog2.f32 %v1593_v13 }
 0x352   : > { %v1656_v15 = vsub.f32 %v3484_v53, %v1625_v58  ;;  %v1657_v14 = vsub.f32 %v3487_v39, %v1625_v58 }
 0x354   : > { %1688 = vst [vmem:[%s3520_s8 + $0xc0] sm:$0xff] %v1656_v15 }
 0x355   : > { %1689 = vst [vmem:[%s3520_s8 + $0xc8] sm:$0xff] %v1657_v14 }
 0x357   : > { %v2355_v43 = vpop.eup %2354 }
 0x358   : > { %v1627_v8 = vmul.f32 0.6931472, %v2355_v43  ;;  %v1596_v50 = vpop.xlane.xlu1 %1595 }
 0x359   : > { %2356 = vlog2.f32 %v1596_v50 }
 0x35a   : > { %v1658_v60 = vsub.f32 %v3492_v27, %v1627_v8  ;;  %v1659_v46 = vsub.f32 %v3495_v37, %v1627_v8 }
 0x35c   : > { %1690 = vst [vmem:[%s3520_s8 + $0xd0] sm:$0xff] %v1658_v60 }
 0x35d   : > { %1691 = vst [vmem:[%s3520_s8 + $0xd8] sm:$0xff] %v1659_v46 }
 0x35f   : > { %v2357_v44 = vpop.eup %2356 }
 0x360   : > { %v1629_v53 = vmul.f32 0.6931472, %v2357_v44 }
 0x361   : > { %v1599_v24 = vpop.xlane.xlu2 %1598 }
 0x362   : > { %v1660_v39 = vsub.f32 %v3500_v35, %v1629_v53  ;;  %v1661_v40 = vsub.f32 %v3503_v54, %v1629_v53  ;;  %2358 = vlog2.f32 %v1599_v24 }
 0x364   : > { %1692 = vst [vmem:[%s3520_s8 + $0xe0] sm:$0xff] %v1660_v39 }
 0x365   : > { %1693 = vst [vmem:[%s3520_s8 + $0xe8] sm:$0xff] %v1661_v40 }
 0x368   : > { %v2359_v27 = vpop.eup %2358 }
 0x369   : > { %v1631_v37 = vmul.f32 0.6931472, %v2359_v27 }
 0x36b   : > { %v1662_v41 = vsub.f32 %v3508_v7, %v1631_v37  ;;  %v1663_v35 = vsub.f32 %v3511_v0, %v1631_v37 }
 0x36d   : > { %1694 = vst [vmem:[%s3520_s8 + $0xf0] sm:$0xff] %v1662_v41 }
 0x36e   : > { %1695 = vst [vmem:[%s3520_s8 + $0xf8] sm:$0xff] %v1663_v35 }
 0x36f   : > { %2417 = shalt.err (!%p2414_p8)
}
 0x370   : > { %s2464_s6 = smov 256   ;;  %s2465_s7 = smov 16  }
 0x371   : > { %2192 = dma.vmem_to_hbm [thread:$0]  (%p2534_p5), %s1711_s13, 4096, %s1713_s16, %s1697_s22, %s2464_s6, %s2464_s6, %s2465_s7  }
 0x372 PF: > { %p2204_p9 = scmp.ge.s32.totalorder %s2456_s21, 2  ;;  %s1727_s8 = sand.u32 1, %s2444_s18  }
 0x373   : > { %s1728_s9 = scalar_lea.sflag [#allocation4], %s1727_s8 }
 0x374   : > { %p2199_p10 = pnand %p2204_p9, %p2538_p6 }
 0x376   : > { %p2200_p11 = pneg %p2199_p10 }
 0x378   : > { %2439 = dma.done.wait (%p2200_p11), %s1728_s9, 4096  }
 0x379   : > { %2441 = vsyncadd (%p2200_p11), %s1728_s9, 4294963200  ;;  %p16_p12 = scmp.ge.s32.totalorder %s2521_s24, 4   ;;  %s3742_s18 = smov %s2448_s19 }
 0x37a   : > { %s3743_s19 = smov %s2452_s20  ;;  %s3744_s20 = smov %s2532_s27 }
 0x37b   : > { %s3745_s21 = smov %s2521_s24  ;;  %18 = sbr.rel (!%p16_p12) target bundleno = 4 (0x4), region = 80 }
 0x380   :  { %1734 = vsyncpa [#allocation3], 1 }
 0x381   :  { %1736 = vsyncpa [#allocation3 + $0x1], 1 }
 0x382   :  { %1737 = vsyncpa [#allocation4], 1 }
 0x383   :  { %1739 = vsyncpa [#allocation4 + $0x1], 1 }

</bundles_post_ra>
